<compile_context>
chip_gen: v5e
topology: v5e:2x2
jax: 0.10.0
libtpu: 0.0.40
codegen_flags: <defaults>
</compile_context>

<pallas_src>
import functools
import numpy as np
import jax
import jax.numpy as jnp
from jax import lax
from jax.experimental import pallas as pl
from jax.experimental.pallas import tpu as pltpu

DROPOUT_P = 0.2
DROPOUT_SCALE = 1.0 / (1.0 - DROPOUT_P)
DROPOUT_THRESHOLD = np.uint32(round(DROPOUT_P * (2 ** 32)))  # keep iff bits >= thr


def lstm_stage7_kernel(gx_ref,    # (TILE_T, B, 4H) f32  : x-projection + bias (precomputed)
                       res_ref,   # (TILE_T, B, H)  f32  : residual (input2)
                       bits_ref,  # (TILE_T, B, H)  u32  : dropout random bits
                       whh_ref,   # (H, 4H)         bf16 : recurrent weight, VMEM-resident
                       out6_ref,  # (TILE_T, B, H)  f32
                       out8_ref,  # (TILE_T, B, H)  f32
                       h_ref, c_ref):  # VMEM scratch (B, H) f32, carried across grid steps
    H = h_ref.shape[-1]
    tile_t = gx_ref.shape[0]

    @pl.when(pl.program_id(0) == 0)
    def _():
        h_ref[...] = jnp.zeros_like(h_ref)
        c_ref[...] = jnp.zeros_like(c_ref)

    h = h_ref[...]
    c = c_ref[...]
    whh = whh_ref[...]                       # hoisted: load the resident weight once
    thr = jnp.uint32(DROPOUT_THRESHOLD)
    scale = jnp.float32(DROPOUT_SCALE)

    # tile_t is small and static -> fully unrolled inner time loop; the only
    # per-step matmul is (B, H) x (H, 4H) on the VMEM-resident W_hh.
    for i in range(tile_t):
        gates = gx_ref[i] + jnp.dot(h.astype(whh.dtype), whh,
                                    preferred_element_type=jnp.float32)  # (B, 4H)
        # PyTorch gate order: i, f, g, o
        i_g = jax.nn.sigmoid(gates[:, 0:H])
        f_g = jax.nn.sigmoid(gates[:, H:2 * H])
        g_g = jnp.tanh(gates[:, 2 * H:3 * H])
        o_g = jax.nn.sigmoid(gates[:, 3 * H:4 * H])
        c = f_g * c + i_g * g_g
        h = o_g * jnp.tanh(c)

        out6 = h + res_ref[i]
        out6_ref[i] = out6
        keep = bits_ref[i] >= thr            # integer-threshold dropout mask
        out8_ref[i] = jnp.where(keep, out6 * scale, jnp.float32(0.0))

    h_ref[...] = h
    c_ref[...] = c


def _dropout_bits(seed, shape):
    return jax.random.bits(jax.random.PRNGKey(seed), shape, dtype=jnp.uint32)


def _input_projection(input0, input1, params):
    """Hoisted x-projection: one batched (T*B, H) x (H, 4H) matmul per input, + bias."""
    wih0, wih1, _, bias = params
    T, B, H = input0.shape
    x0 = input0.reshape(T * B, H).astype(wih0.dtype)
    x1 = input1.reshape(T * B, H).astype(wih1.dtype)
    gx = (jnp.dot(x0, wih0, preferred_element_type=jnp.float32)
          + jnp.dot(x1, wih1, preferred_element_type=jnp.float32)
          + bias)                                                  # (T*B, 4H) f32
    return gx.reshape(T, B, 4 * H)


def stage7_forward(input1, input2, input0, params, seed, tile_t=8):
    """input0, input1, input2: (T, B, H) f32.  Returns (out6, out8, out1)."""
    T, B, H = input2.shape
    wih0, wih1, whh, bias = params
    del wih0, wih1, bias  # consumed by the hoisted projection only

    tile_t = min(tile_t, T)
    while T % tile_t:
        tile_t -= 1

    gx = _input_projection(input0, input1, params)   # (T, B, 4H) f32
    bits = _dropout_bits(seed, (T, B, H))            # (T, B, H) uint32

    # Rough VMEM requirement (double-buffered pipeline blocks + carry scratch),
    # with margin; clamp so it stays legal on v7x's 64 MiB physical VMEM.
    whh_bytes = whh.size * whh.dtype.itemsize
    blk_bytes = (4 * tile_t * B * 4 * H            # gates_x block (f32)
                 + 3 * 4 * tile_t * B * H          # res + bits + out6 + out8 ... (see below)
                 + 4 * tile_t * B * H)
    est = 2 * (whh_bytes + blk_bytes) + 2 * B * H * 4
    vmem_limit = int(min(max(2 * est, 32 * 1024 * 1024), 100 * 1024 * 1024))

    grid_spec = pltpu.PrefetchScalarGridSpec(
        num_scalar_prefetch=0,
        grid=(T // tile_t,),
        in_specs=[
            pl.BlockSpec((tile_t, B, 4 * H), lambda t: (t, 0, 0)),   # gates_x
            pl.BlockSpec((tile_t, B, H), lambda t: (t, 0, 0)),       # residual
            pl.BlockSpec((tile_t, B, H), lambda t: (t, 0, 0)),       # dropout bits
            pl.BlockSpec((H, 4 * H), lambda t: (0, 0)),              # W_hh (constant block
                                                                     #  -> fetched once)
        ],
        out_specs=[
            pl.BlockSpec((tile_t, B, H), lambda t: (t, 0, 0)),       # out6
            pl.BlockSpec((tile_t, B, H), lambda t: (t, 0, 0)),       # out8
        ],
        scratch_shapes=[
            pltpu.VMEM((B, H), jnp.float32),   # h carry
            pltpu.VMEM((B, H), jnp.float32),   # c carry
        ],
    )

    out6, out8 = pl.pallas_call(
        lstm_stage7_kernel,
        out_shape=(jax.ShapeDtypeStruct((T, B, H), jnp.float32),
                   jax.ShapeDtypeStruct((T, B, H), jnp.float32)),
        grid_spec=grid_spec,
        compiler_params=pltpu.CompilerParams(
            dimension_semantics=("arbitrary",),   # time recurrence via scratch carry
            vmem_limit_bytes=vmem_limit,
        ),
    )(gx, input2, bits, whh)

    out1 = input1  # .clone() is identity semantics for a functional output
    return out6, out8, out1


def init_lstm_params(key, hidden_size, weight_dtype=jnp.bfloat16):
    """PyTorch LSTM default init: U(-k, k), k = 1/sqrt(hidden_size).
    Returns (W_ih_part0^T, W_ih_part1^T, W_hh^T, b_ih + b_hh)."""
    H = hidden_size
    k = 1.0 / np.sqrt(H)
    k1, k2, k3, k4 = jax.random.split(key, 4)
    w_ih = jax.random.uniform(k1, (4 * H, 2 * H), jnp.float32, -k, k)
    w_hh = jax.random.uniform(k2, (4 * H, H), jnp.float32, -k, k)
    b_ih = jax.random.uniform(k3, (4 * H,), jnp.float32, -k, k)
    b_hh = jax.random.uniform(k4, (4 * H,), jnp.float32, -k, k)
    wih0 = w_ih[:, :H].T.astype(weight_dtype)   # multiplies input0 (first half of concat)
    wih1 = w_ih[:, H:].T.astype(weight_dtype)   # multiplies input1 (second half)
    whh = w_hh.T.astype(weight_dtype)           # (H, 4H)
    bias = (b_ih + b_hh).reshape(1, 4 * H)      # fused bias, f32
    return wih0, wih1, whh, bias


def stage7_reference(input1, input2, input0, params, seed):
    """Pure-JAX reference with the same dtype choices as the kernel."""
    _, _, whh, _ = params
    T, B, H = input2.shape
    gx = _input_projection(input0, input1, params)   # (T, B, 4H)

    def step(carry, g_t):
        h, c = carry
        gates = g_t + jnp.dot(h.astype(whh.dtype), whh,
                              preferred_element_type=jnp.float32)
        i = jax.nn.sigmoid(gates[:, 0:H])
        f = jax.nn.sigmoid(gates[:, H:2 * H])
        g = jnp.tanh(gates[:, 2 * H:3 * H])
        o = jax.nn.sigmoid(gates[:, 3 * H:4 * H])
        c = f * c + i * g
        h = o * jnp.tanh(c)
        return (h, c), h

    h0 = jnp.zeros((B, H), jnp.float32)
    c0 = jnp.zeros((B, H), jnp.float32)
    _, hs = lax.scan(step, (h0, c0), gx)
    out6 = hs + input2
    bits = _dropout_bits(seed, (T, B, H))
    out8 = jnp.where(bits >= jnp.uint32(DROPOUT_THRESHOLD), out6 * DROPOUT_SCALE, 0.0)
    return out6, out8, input1


if __name__ == "__main__":
    # Small shapes consistent with the module: LSTM(2H -> H), H scaled down
    # (real module: H = 1024, input size 2048).
    T, B, H = 16, 2, 32
    key = jax.random.PRNGKey(0)
    k0, k1, k2, kp = jax.random.split(key, 4)

    input0 = jax.random.normal(k0, (T, B, H), jnp.float32)
    input1 = jax.random.normal(k1, (T, B, H), jnp.float32)
    input2 = jax.random.normal(k2, (T, B, H), jnp.float32)
    params = init_lstm_params(kp, hidden_size=H)

    seed = 1234
    fwd = jax.jit(functools.partial(stage7_forward, seed=seed, tile_t=8))
    out6, out8, out1 = fwd(input1, input2, input0, params)
    jax.block_until_ready((out6, out8, out1))

    ref6, ref8, ref1 = stage7_reference(input1, input2, input0, params, seed)
    np.testing.assert_allclose(np.asarray(out6), np.asarray(ref6), atol=2e-3, rtol=2e-3)
    np.testing.assert_allclose(np.asarray(out8), np.asarray(ref8), atol=2e-3, rtol=2e-3)
    np.testing.assert_allclose(np.asarray(out1), np.asarray(input1))

    # Dropout sanity: surviving elements are out6 / (1 - p); the rest are zero.
    o6, o8 = np.asarray(out6), np.asarray(out8)
    kept = o8 != 0.0
    assert np.allclose(o8[kept], o6[kept] * DROPOUT_SCALE, atol=2e-3, rtol=2e-3)
    frac_kept = kept.mean()
    assert 0.6 < frac_kept < 0.95, frac_kept

    print("KERNEL_OK")
</pallas_src>

<mosaic_0001>
module attributes {stable_mosaic.version = 11 : i64} {
  func.func @lstm_stage7_kernel(%arg0: i32, %arg1: memref<8x2x128xf32, #tpu.memory_space<vmem>>, %arg2: memref<8x2x32xf32, #tpu.memory_space<vmem>>, %arg3: memref<8x2x32xi32, #tpu.memory_space<vmem>>, %arg4: memref<32x128xbf16, #tpu.memory_space<vmem>>, %arg5: memref<8x2x32xf32, #tpu.memory_space<vmem>>, %arg6: memref<8x2x32xf32, #tpu.memory_space<vmem>>, %arg7: memref<2x32xf32, #tpu.memory_space<vmem>>, %arg8: memref<2x32xf32, #tpu.memory_space<vmem>>) attributes {dimension_semantics = [#tpu.dimension_semantics<arbitrary>], iteration_bounds = array<i64: 2>, scalar_prefetch = 0 : i64, scratch_operands = 2 : i64, tpu.core_type = #tpu.core_type<tc>, window_params = [{transform_indices = @transform_0, window_bounds = array<i64: 8, 2, 128>}, {transform_indices = @transform_1, window_bounds = array<i64: 8, 2, 32>}, {transform_indices = @transform_2, window_bounds = array<i64: 8, 2, 32>}, {pipeline_mode = #tpu.pipeline_mode<synchronous>, transform_indices = @transform_3, window_bounds = array<i64: 32, 128>}, {transform_indices = @transform_4, window_bounds = array<i64: 8, 2, 32>}, {transform_indices = @transform_5, window_bounds = array<i64: 8, 2, 32>}]} {
    %c0_i32 = arith.constant 0 : i32
    %0 = arith.cmpi eq, %arg0, %c0_i32 : i32
    %1 = arith.extui %0 : i1 to i32
    %c0_i32_0 = arith.constant 0 : i32
    %2 = arith.cmpi ne, %1, %c0_i32_0 : i32
    scf.if %2 {
      %cst_177 = arith.constant 0.000000e+00 : f32
      %384 = vector.broadcast %cst_177 : f32 to vector<2x32xf32>
      %c0_178 = arith.constant 0 : index
      %c0_179 = arith.constant 0 : index
      %385 = vector.load %arg7[%c0_178, %c0_179] : memref<2x32xf32, #tpu.memory_space<vmem>>, vector<2x32xf32>
      tpu.vector_store %arg7[%c0_178, %c0_179], %384 {strides = array<i32>} : memref<2x32xf32, #tpu.memory_space<vmem>>, vector<2x32xf32>,
      %cst_180 = arith.constant 0.000000e+00 : f32
      %386 = vector.broadcast %cst_180 : f32 to vector<2x32xf32>
      %c0_181 = arith.constant 0 : index
      %c0_182 = arith.constant 0 : index
      %387 = vector.load %arg8[%c0_181, %c0_182] : memref<2x32xf32, #tpu.memory_space<vmem>>, vector<2x32xf32>
      tpu.vector_store %arg8[%c0_181, %c0_182], %386 {strides = array<i32>} : memref<2x32xf32, #tpu.memory_space<vmem>>, vector<2x32xf32>,
    } else {
    }
    %c0 = arith.constant 0 : index
    %c0_1 = arith.constant 0 : index
    %3 = vector.load %arg7[%c0, %c0_1] : memref<2x32xf32, #tpu.memory_space<vmem>>, vector<2x32xf32>
    %c0_2 = arith.constant 0 : index
    %c0_3 = arith.constant 0 : index
    %4 = vector.load %arg8[%c0_2, %c0_3] : memref<2x32xf32, #tpu.memory_space<vmem>>, vector<2x32xf32>
    %c0_4 = arith.constant 0 : index
    %c0_5 = arith.constant 0 : index
    %5 = vector.load %arg4[%c0_4, %c0_5] : memref<32x128xbf16, #tpu.memory_space<vmem>>, vector<32x128xbf16>
    %c0_6 = arith.constant 0 : index
    %c0_7 = arith.constant 0 : index
    %c0_8 = arith.constant 0 : index
    %6 = vector.load %arg1[%c0_6, %c0_7, %c0_8] : memref<8x2x128xf32, #tpu.memory_space<vmem>>, vector<1x2x128xf32>
    %7 = vector.shape_cast %6 : vector<1x2x128xf32> to vector<2x128xf32>
    %8 = arith.truncf %3 : vector<2x32xf32> to vector<2x32xbf16>
    %cst = arith.constant dense<0.000000e+00> : vector<2x128xf32>
    %9 = tpu.matmul %8, %5, %cst {dimension_numbers = #tpu.dot_dimension_numbers<[1], [0], [0], [1], [0, 0, 1, 1], [], []>} : vector<2x32xbf16>, vector<32x128xbf16>, vector<2x128xf32> -> vector<2x128xf32>
    %10 = arith.addf %7, %9 : vector<2x128xf32>
    %11 = vector.extract_strided_slice %10 {offsets = [0, 0], sizes = [2, 32], strides = [1, 1]} : vector<2x128xf32> to vector<2x32xf32>
    %12 = arith.negf %11 : vector<2x32xf32>
    %13 = math.exp %12 : vector<2x32xf32>
    %cst_9 = arith.constant 1.000000e+00 : f32
    %14 = vector.broadcast %cst_9 : f32 to vector<2x32xf32>
    %15 = arith.addf %14, %13 : vector<2x32xf32>
    %16 = arith.divf %14, %15 : vector<2x32xf32>
    %17 = vector.extract_strided_slice %10 {offsets = [0, 32], sizes = [2, 32], strides = [1, 1]} : vector<2x128xf32> to vector<2x32xf32>
    %18 = arith.negf %17 : vector<2x32xf32>
    %19 = math.exp %18 : vector<2x32xf32>
    %cst_10 = arith.constant 1.000000e+00 : f32
    %20 = vector.broadcast %cst_10 : f32 to vector<2x32xf32>
    %21 = arith.addf %20, %19 : vector<2x32xf32>
    %22 = arith.divf %20, %21 : vector<2x32xf32>
    %23 = vector.extract_strided_slice %10 {offsets = [0, 64], sizes = [2, 32], strides = [1, 1]} : vector<2x128xf32> to vector<2x32xf32>
    %24 = math.tanh %23 : vector<2x32xf32>
    %25 = vector.extract_strided_slice %10 {offsets = [0, 96], sizes = [2, 32], strides = [1, 1]} : vector<2x128xf32> to vector<2x32xf32>
    %26 = arith.negf %25 : vector<2x32xf32>
    %27 = math.exp %26 : vector<2x32xf32>
    %cst_11 = arith.constant 1.000000e+00 : f32
    %28 = vector.broadcast %cst_11 : f32 to vector<2x32xf32>
    %29 = arith.addf %28, %27 : vector<2x32xf32>
    %30 = arith.divf %28, %29 : vector<2x32xf32>
    %31 = arith.mulf %22, %4 : vector<2x32xf32>
    %32 = arith.mulf %16, %24 : vector<2x32xf32>
    %33 = arith.addf %31, %32 : vector<2x32xf32>
    %34 = math.tanh %33 : vector<2x32xf32>
    %35 = arith.mulf %30, %34 : vector<2x32xf32>
    %c0_12 = arith.constant 0 : index
    %c0_13 = arith.constant 0 : index
    %c0_14 = arith.constant 0 : index
    %36 = vector.load %arg2[%c0_12, %c0_13, %c0_14] : memref<8x2x32xf32, #tpu.memory_space<vmem>>, vector<1x2x32xf32>
    %37 = vector.shape_cast %36 : vector<1x2x32xf32> to vector<2x32xf32>
    %38 = arith.addf %35, %37 : vector<2x32xf32>
    %c0_15 = arith.constant 0 : index
    %c0_16 = arith.constant 0 : index
    %c0_17 = arith.constant 0 : index
    %39 = vector.load %arg5[%c0_15, %c0_16, %c0_17] : memref<8x2x32xf32, #tpu.memory_space<vmem>>, vector<1x2x32xf32>
    %40 = vector.shape_cast %39 : vector<1x2x32xf32> to vector<2x32xf32>
    %41 = vector.shape_cast %38 : vector<2x32xf32> to vector<1x2x32xf32>
    tpu.vector_store %arg5[%c0_15, %c0_16, %c0_17], %41 {strides = array<i32>} : memref<8x2x32xf32, #tpu.memory_space<vmem>>, vector<1x2x32xf32>,
    %c0_18 = arith.constant 0 : index
    %c0_19 = arith.constant 0 : index
    %c0_20 = arith.constant 0 : index
    %42 = vector.load %arg3[%c0_18, %c0_19, %c0_20] : memref<8x2x32xi32, #tpu.memory_space<vmem>>, vector<1x2x32xi32>
    %43 = vector.shape_cast %42 : vector<1x2x32xi32> to vector<2x32xi32>
    %c858993459_i32 = arith.constant 858993459 : i32
    %44 = vector.broadcast %c858993459_i32 : i32 to vector<2x32xi32>
    %45 = arith.cmpi uge, %43, %44 : vector<2x32xi32>
    %cst_21 = arith.constant 1.250000e+00 : f32
    %46 = vector.broadcast %cst_21 : f32 to vector<2x32xf32>
    %47 = arith.mulf %38, %46 : vector<2x32xf32>
    %cst_22 = arith.constant 0.000000e+00 : f32
    %48 = vector.broadcast %cst_22 : f32 to vector<2x32xf32>
    %49 = arith.select %45, %47, %48 : vector<2x32xi1>, vector<2x32xf32>
    %c0_23 = arith.constant 0 : index
    %c0_24 = arith.constant 0 : index
    %c0_25 = arith.constant 0 : index
    %50 = vector.load %arg6[%c0_23, %c0_24, %c0_25] : memref<8x2x32xf32, #tpu.memory_space<vmem>>, vector<1x2x32xf32>
    %51 = vector.shape_cast %50 : vector<1x2x32xf32> to vector<2x32xf32>
    %52 = vector.shape_cast %49 : vector<2x32xf32> to vector<1x2x32xf32>
    tpu.vector_store %arg6[%c0_23, %c0_24, %c0_25], %52 {strides = array<i32>} : memref<8x2x32xf32, #tpu.memory_space<vmem>>, vector<1x2x32xf32>,
    %c1 = arith.constant 1 : index
    %c0_26 = arith.constant 0 : index
    %c0_27 = arith.constant 0 : index
    %53 = vector.load %arg1[%c1, %c0_26, %c0_27] : memref<8x2x128xf32, #tpu.memory_space<vmem>>, vector<1x2x128xf32>
    %54 = vector.shape_cast %53 : vector<1x2x128xf32> to vector<2x128xf32>
    %55 = arith.truncf %35 : vector<2x32xf32> to vector<2x32xbf16>
    %cst_28 = arith.constant dense<0.000000e+00> : vector<2x128xf32>
    %56 = tpu.matmul %55, %5, %cst_28 {dimension_numbers = #tpu.dot_dimension_numbers<[1], [0], [0], [1], [0, 0, 1, 1], [], []>} : vector<2x32xbf16>, vector<32x128xbf16>, vector<2x128xf32> -> vector<2x128xf32>
    %57 = arith.addf %54, %56 : vector<2x128xf32>
    %58 = vector.extract_strided_slice %57 {offsets = [0, 0], sizes = [2, 32], strides = [1, 1]} : vector<2x128xf32> to vector<2x32xf32>
    %59 = arith.negf %58 : vector<2x32xf32>
    %60 = math.exp %59 : vector<2x32xf32>
    %cst_29 = arith.constant 1.000000e+00 : f32
    %61 = vector.broadcast %cst_29 : f32 to vector<2x32xf32>
    %62 = arith.addf %61, %60 : vector<2x32xf32>
    %63 = arith.divf %61, %62 : vector<2x32xf32>
    %64 = vector.extract_strided_slice %57 {offsets = [0, 32], sizes = [2, 32], strides = [1, 1]} : vector<2x128xf32> to vector<2x32xf32>
    %65 = arith.negf %64 : vector<2x32xf32>
    %66 = math.exp %65 : vector<2x32xf32>
    %cst_30 = arith.constant 1.000000e+00 : f32
    %67 = vector.broadcast %cst_30 : f32 to vector<2x32xf32>
    %68 = arith.addf %67, %66 : vector<2x32xf32>
    %69 = arith.divf %67, %68 : vector<2x32xf32>
    %70 = vector.extract_strided_slice %57 {offsets = [0, 64], sizes = [2, 32], strides = [1, 1]} : vector<2x128xf32> to vector<2x32xf32>
    %71 = math.tanh %70 : vector<2x32xf32>
    %72 = vector.extract_strided_slice %57 {offsets = [0, 96], sizes = [2, 32], strides = [1, 1]} : vector<2x128xf32> to vector<2x32xf32>
    %73 = arith.negf %72 : vector<2x32xf32>
    %74 = math.exp %73 : vector<2x32xf32>
    %cst_31 = arith.constant 1.000000e+00 : f32
    %75 = vector.broadcast %cst_31 : f32 to vector<2x32xf32>
    %76 = arith.addf %75, %74 : vector<2x32xf32>
    %77 = arith.divf %75, %76 : vector<2x32xf32>
    %78 = arith.mulf %69, %33 : vector<2x32xf32>
    %79 = arith.mulf %63, %71 : vector<2x32xf32>
    %80 = arith.addf %78, %79 : vector<2x32xf32>
    %81 = math.tanh %80 : vector<2x32xf32>
    %82 = arith.mulf %77, %81 : vector<2x32xf32>
    %c1_32 = arith.constant 1 : index
    %c0_33 = arith.constant 0 : index
    %c0_34 = arith.constant 0 : index
    %83 = vector.load %arg2[%c1_32, %c0_33, %c0_34] : memref<8x2x32xf32, #tpu.memory_space<vmem>>, vector<1x2x32xf32>
    %84 = vector.shape_cast %83 : vector<1x2x32xf32> to vector<2x32xf32>
    %85 = arith.addf %82, %84 : vector<2x32xf32>
    %c1_35 = arith.constant 1 : index
    %c0_36 = arith.constant 0 : index
    %c0_37 = arith.constant 0 : index
    %86 = vector.load %arg5[%c1_35, %c0_36, %c0_37] : memref<8x2x32xf32, #tpu.memory_space<vmem>>, vector<1x2x32xf32>
    %87 = vector.shape_cast %86 : vector<1x2x32xf32> to vector<2x32xf32>
    %88 = vector.shape_cast %85 : vector<2x32xf32> to vector<1x2x32xf32>
    tpu.vector_store %arg5[%c1_35, %c0_36, %c0_37], %88 {strides = array<i32>} : memref<8x2x32xf32, #tpu.memory_space<vmem>>, vector<1x2x32xf32>,
    %c1_38 = arith.constant 1 : index
    %c0_39 = arith.constant 0 : index
    %c0_40 = arith.constant 0 : index
    %89 = vector.load %arg3[%c1_38, %c0_39, %c0_40] : memref<8x2x32xi32, #tpu.memory_space<vmem>>, vector<1x2x32xi32>
    %90 = vector.shape_cast %89 : vector<1x2x32xi32> to vector<2x32xi32>
    %c858993459_i32_41 = arith.constant 858993459 : i32
    %91 = vector.broadcast %c858993459_i32_41 : i32 to vector<2x32xi32>
    %92 = arith.cmpi uge, %90, %91 : vector<2x32xi32>
    %cst_42 = arith.constant 1.250000e+00 : f32
    %93 = vector.broadcast %cst_42 : f32 to vector<2x32xf32>
    %94 = arith.mulf %85, %93 : vector<2x32xf32>
    %cst_43 = arith.constant 0.000000e+00 : f32
    %95 = vector.broadcast %cst_43 : f32 to vector<2x32xf32>
    %96 = arith.select %92, %94, %95 : vector<2x32xi1>, vector<2x32xf32>
    %c1_44 = arith.constant 1 : index
    %c0_45 = arith.constant 0 : index
    %c0_46 = arith.constant 0 : index
    %97 = vector.load %arg6[%c1_44, %c0_45, %c0_46] : memref<8x2x32xf32, #tpu.memory_space<vmem>>, vector<1x2x32xf32>
    %98 = vector.shape_cast %97 : vector<1x2x32xf32> to vector<2x32xf32>
    %99 = vector.shape_cast %96 : vector<2x32xf32> to vector<1x2x32xf32>
    tpu.vector_store %arg6[%c1_44, %c0_45, %c0_46], %99 {strides = array<i32>} : memref<8x2x32xf32, #tpu.memory_space<vmem>>, vector<1x2x32xf32>,
    %c2 = arith.constant 2 : index
    %c0_47 = arith.constant 0 : index
    %c0_48 = arith.constant 0 : index
    %100 = vector.load %arg1[%c2, %c0_47, %c0_48] : memref<8x2x128xf32, #tpu.memory_space<vmem>>, vector<1x2x128xf32>
    %101 = vector.shape_cast %100 : vector<1x2x128xf32> to vector<2x128xf32>
    %102 = arith.truncf %82 : vector<2x32xf32> to vector<2x32xbf16>
    %cst_49 = arith.constant dense<0.000000e+00> : vector<2x128xf32>
    %103 = tpu.matmul %102, %5, %cst_49 {dimension_numbers = #tpu.dot_dimension_numbers<[1], [0], [0], [1], [0, 0, 1, 1], [], []>} : vector<2x32xbf16>, vector<32x128xbf16>, vector<2x128xf32> -> vector<2x128xf32>
    %104 = arith.addf %101, %103 : vector<2x128xf32>
    %105 = vector.extract_strided_slice %104 {offsets = [0, 0], sizes = [2, 32], strides = [1, 1]} : vector<2x128xf32> to vector<2x32xf32>
    %106 = arith.negf %105 : vector<2x32xf32>
    %107 = math.exp %106 : vector<2x32xf32>
    %cst_50 = arith.constant 1.000000e+00 : f32
    %108 = vector.broadcast %cst_50 : f32 to vector<2x32xf32>
    %109 = arith.addf %108, %107 : vector<2x32xf32>
    %110 = arith.divf %108, %109 : vector<2x32xf32>
    %111 = vector.extract_strided_slice %104 {offsets = [0, 32], sizes = [2, 32], strides = [1, 1]} : vector<2x128xf32> to vector<2x32xf32>
    %112 = arith.negf %111 : vector<2x32xf32>
    %113 = math.exp %112 : vector<2x32xf32>
    %cst_51 = arith.constant 1.000000e+00 : f32
    %114 = vector.broadcast %cst_51 : f32 to vector<2x32xf32>
    %115 = arith.addf %114, %113 : vector<2x32xf32>
    %116 = arith.divf %114, %115 : vector<2x32xf32>
    %117 = vector.extract_strided_slice %104 {offsets = [0, 64], sizes = [2, 32], strides = [1, 1]} : vector<2x128xf32> to vector<2x32xf32>
    %118 = math.tanh %117 : vector<2x32xf32>
    %119 = vector.extract_strided_slice %104 {offsets = [0, 96], sizes = [2, 32], strides = [1, 1]} : vector<2x128xf32> to vector<2x32xf32>
    %120 = arith.negf %119 : vector<2x32xf32>
    %121 = math.exp %120 : vector<2x32xf32>
    %cst_52 = arith.constant 1.000000e+00 : f32
    %122 = vector.broadcast %cst_52 : f32 to vector<2x32xf32>
    %123 = arith.addf %122, %121 : vector<2x32xf32>
    %124 = arith.divf %122, %123 : vector<2x32xf32>
    %125 = arith.mulf %116, %80 : vector<2x32xf32>
    %126 = arith.mulf %110, %118 : vector<2x32xf32>
    %127 = arith.addf %125, %126 : vector<2x32xf32>
    %128 = math.tanh %127 : vector<2x32xf32>
    %129 = arith.mulf %124, %128 : vector<2x32xf32>
    %c2_53 = arith.constant 2 : index
    %c0_54 = arith.constant 0 : index
    %c0_55 = arith.constant 0 : index
    %130 = vector.load %arg2[%c2_53, %c0_54, %c0_55] : memref<8x2x32xf32, #tpu.memory_space<vmem>>, vector<1x2x32xf32>
    %131 = vector.shape_cast %130 : vector<1x2x32xf32> to vector<2x32xf32>
    %132 = arith.addf %129, %131 : vector<2x32xf32>
    %c2_56 = arith.constant 2 : index
    %c0_57 = arith.constant 0 : index
    %c0_58 = arith.constant 0 : index
    %133 = vector.load %arg5[%c2_56, %c0_57, %c0_58] : memref<8x2x32xf32, #tpu.memory_space<vmem>>, vector<1x2x32xf32>
    %134 = vector.shape_cast %133 : vector<1x2x32xf32> to vector<2x32xf32>
    %135 = vector.shape_cast %132 : vector<2x32xf32> to vector<1x2x32xf32>
    tpu.vector_store %arg5[%c2_56, %c0_57, %c0_58], %135 {strides = array<i32>} : memref<8x2x32xf32, #tpu.memory_space<vmem>>, vector<1x2x32xf32>,
    %c2_59 = arith.constant 2 : index
    %c0_60 = arith.constant 0 : index
    %c0_61 = arith.constant 0 : index
    %136 = vector.load %arg3[%c2_59, %c0_60, %c0_61] : memref<8x2x32xi32, #tpu.memory_space<vmem>>, vector<1x2x32xi32>
    %137 = vector.shape_cast %136 : vector<1x2x32xi32> to vector<2x32xi32>
    %c858993459_i32_62 = arith.constant 858993459 : i32
    %138 = vector.broadcast %c858993459_i32_62 : i32 to vector<2x32xi32>
    %139 = arith.cmpi uge, %137, %138 : vector<2x32xi32>
    %cst_63 = arith.constant 1.250000e+00 : f32
    %140 = vector.broadcast %cst_63 : f32 to vector<2x32xf32>
    %141 = arith.mulf %132, %140 : vector<2x32xf32>
    %cst_64 = arith.constant 0.000000e+00 : f32
    %142 = vector.broadcast %cst_64 : f32 to vector<2x32xf32>
    %143 = arith.select %139, %141, %142 : vector<2x32xi1>, vector<2x32xf32>
    %c2_65 = arith.constant 2 : index
    %c0_66 = arith.constant 0 : index
    %c0_67 = arith.constant 0 : index
    %144 = vector.load %arg6[%c2_65, %c0_66, %c0_67] : memref<8x2x32xf32, #tpu.memory_space<vmem>>, vector<1x2x32xf32>
    %145 = vector.shape_cast %144 : vector<1x2x32xf32> to vector<2x32xf32>
    %146 = vector.shape_cast %143 : vector<2x32xf32> to vector<1x2x32xf32>
    tpu.vector_store %arg6[%c2_65, %c0_66, %c0_67], %146 {strides = array<i32>} : memref<8x2x32xf32, #tpu.memory_space<vmem>>, vector<1x2x32xf32>,
    %c3 = arith.constant 3 : index
    %c0_68 = arith.constant 0 : index
    %c0_69 = arith.constant 0 : index
    %147 = vector.load %arg1[%c3, %c0_68, %c0_69] : memref<8x2x128xf32, #tpu.memory_space<vmem>>, vector<1x2x128xf32>
    %148 = vector.shape_cast %147 : vector<1x2x128xf32> to vector<2x128xf32>
    %149 = arith.truncf %129 : vector<2x32xf32> to vector<2x32xbf16>
    %cst_70 = arith.constant dense<0.000000e+00> : vector<2x128xf32>
    %150 = tpu.matmul %149, %5, %cst_70 {dimension_numbers = #tpu.dot_dimension_numbers<[1], [0], [0], [1], [0, 0, 1, 1], [], []>} : vector<2x32xbf16>, vector<32x128xbf16>, vector<2x128xf32> -> vector<2x128xf32>
    %151 = arith.addf %148, %150 : vector<2x128xf32>
    %152 = vector.extract_strided_slice %151 {offsets = [0, 0], sizes = [2, 32], strides = [1, 1]} : vector<2x128xf32> to vector<2x32xf32>
    %153 = arith.negf %152 : vector<2x32xf32>
    %154 = math.exp %153 : vector<2x32xf32>
    %cst_71 = arith.constant 1.000000e+00 : f32
    %155 = vector.broadcast %cst_71 : f32 to vector<2x32xf32>
    %156 = arith.addf %155, %154 : vector<2x32xf32>
    %157 = arith.divf %155, %156 : vector<2x32xf32>
    %158 = vector.extract_strided_slice %151 {offsets = [0, 32], sizes = [2, 32], strides = [1, 1]} : vector<2x128xf32> to vector<2x32xf32>
    %159 = arith.negf %158 : vector<2x32xf32>
    %160 = math.exp %159 : vector<2x32xf32>
    %cst_72 = arith.constant 1.000000e+00 : f32
    %161 = vector.broadcast %cst_72 : f32 to vector<2x32xf32>
    %162 = arith.addf %161, %160 : vector<2x32xf32>
    %163 = arith.divf %161, %162 : vector<2x32xf32>
    %164 = vector.extract_strided_slice %151 {offsets = [0, 64], sizes = [2, 32], strides = [1, 1]} : vector<2x128xf32> to vector<2x32xf32>
    %165 = math.tanh %164 : vector<2x32xf32>
    %166 = vector.extract_strided_slice %151 {offsets = [0, 96], sizes = [2, 32], strides = [1, 1]} : vector<2x128xf32> to vector<2x32xf32>
    %167 = arith.negf %166 : vector<2x32xf32>
    %168 = math.exp %167 : vector<2x32xf32>
    %cst_73 = arith.constant 1.000000e+00 : f32
    %169 = vector.broadcast %cst_73 : f32 to vector<2x32xf32>
    %170 = arith.addf %169, %168 : vector<2x32xf32>
    %171 = arith.divf %169, %170 : vector<2x32xf32>
    %172 = arith.mulf %163, %127 : vector<2x32xf32>
    %173 = arith.mulf %157, %165 : vector<2x32xf32>
    %174 = arith.addf %172, %173 : vector<2x32xf32>
    %175 = math.tanh %174 : vector<2x32xf32>
    %176 = arith.mulf %171, %175 : vector<2x32xf32>
    %c3_74 = arith.constant 3 : index
    %c0_75 = arith.constant 0 : index
    %c0_76 = arith.constant 0 : index
    %177 = vector.load %arg2[%c3_74, %c0_75, %c0_76] : memref<8x2x32xf32, #tpu.memory_space<vmem>>, vector<1x2x32xf32>
    %178 = vector.shape_cast %177 : vector<1x2x32xf32> to vector<2x32xf32>
    %179 = arith.addf %176, %178 : vector<2x32xf32>
    %c3_77 = arith.constant 3 : index
    %c0_78 = arith.constant 0 : index
    %c0_79 = arith.constant 0 : index
    %180 = vector.load %arg5[%c3_77, %c0_78, %c0_79] : memref<8x2x32xf32, #tpu.memory_space<vmem>>, vector<1x2x32xf32>
    %181 = vector.shape_cast %180 : vector<1x2x32xf32> to vector<2x32xf32>
    %182 = vector.shape_cast %179 : vector<2x32xf32> to vector<1x2x32xf32>
    tpu.vector_store %arg5[%c3_77, %c0_78, %c0_79], %182 {strides = array<i32>} : memref<8x2x32xf32, #tpu.memory_space<vmem>>, vector<1x2x32xf32>,
    %c3_80 = arith.constant 3 : index
    %c0_81 = arith.constant 0 : index
    %c0_82 = arith.constant 0 : index
    %183 = vector.load %arg3[%c3_80, %c0_81, %c0_82] : memref<8x2x32xi32, #tpu.memory_space<vmem>>, vector<1x2x32xi32>
    %184 = vector.shape_cast %183 : vector<1x2x32xi32> to vector<2x32xi32>
    %c858993459_i32_83 = arith.constant 858993459 : i32
    %185 = vector.broadcast %c858993459_i32_83 : i32 to vector<2x32xi32>
    %186 = arith.cmpi uge, %184, %185 : vector<2x32xi32>
    %cst_84 = arith.constant 1.250000e+00 : f32
    %187 = vector.broadcast %cst_84 : f32 to vector<2x32xf32>
    %188 = arith.mulf %179, %187 : vector<2x32xf32>
    %cst_85 = arith.constant 0.000000e+00 : f32
    %189 = vector.broadcast %cst_85 : f32 to vector<2x32xf32>
    %190 = arith.select %186, %188, %189 : vector<2x32xi1>, vector<2x32xf32>
    %c3_86 = arith.constant 3 : index
    %c0_87 = arith.constant 0 : index
    %c0_88 = arith.constant 0 : index
    %191 = vector.load %arg6[%c3_86, %c0_87, %c0_88] : memref<8x2x32xf32, #tpu.memory_space<vmem>>, vector<1x2x32xf32>
    %192 = vector.shape_cast %191 : vector<1x2x32xf32> to vector<2x32xf32>
    %193 = vector.shape_cast %190 : vector<2x32xf32> to vector<1x2x32xf32>
    tpu.vector_store %arg6[%c3_86, %c0_87, %c0_88], %193 {strides = array<i32>} : memref<8x2x32xf32, #tpu.memory_space<vmem>>, vector<1x2x32xf32>,
    %c4 = arith.constant 4 : index
    %c0_89 = arith.constant 0 : index
    %c0_90 = arith.constant 0 : index
    %194 = vector.load %arg1[%c4, %c0_89, %c0_90] : memref<8x2x128xf32, #tpu.memory_space<vmem>>, vector<1x2x128xf32>
    %195 = vector.shape_cast %194 : vector<1x2x128xf32> to vector<2x128xf32>
    %196 = arith.truncf %176 : vector<2x32xf32> to vector<2x32xbf16>
    %cst_91 = arith.constant dense<0.000000e+00> : vector<2x128xf32>
    %197 = tpu.matmul %196, %5, %cst_91 {dimension_numbers = #tpu.dot_dimension_numbers<[1], [0], [0], [1], [0, 0, 1, 1], [], []>} : vector<2x32xbf16>, vector<32x128xbf16>, vector<2x128xf32> -> vector<2x128xf32>
    %198 = arith.addf %195, %197 : vector<2x128xf32>
    %199 = vector.extract_strided_slice %198 {offsets = [0, 0], sizes = [2, 32], strides = [1, 1]} : vector<2x128xf32> to vector<2x32xf32>
    %200 = arith.negf %199 : vector<2x32xf32>
    %201 = math.exp %200 : vector<2x32xf32>
    %cst_92 = arith.constant 1.000000e+00 : f32
    %202 = vector.broadcast %cst_92 : f32 to vector<2x32xf32>
    %203 = arith.addf %202, %201 : vector<2x32xf32>
    %204 = arith.divf %202, %203 : vector<2x32xf32>
    %205 = vector.extract_strided_slice %198 {offsets = [0, 32], sizes = [2, 32], strides = [1, 1]} : vector<2x128xf32> to vector<2x32xf32>
    %206 = arith.negf %205 : vector<2x32xf32>
    %207 = math.exp %206 : vector<2x32xf32>
    %cst_93 = arith.constant 1.000000e+00 : f32
    %208 = vector.broadcast %cst_93 : f32 to vector<2x32xf32>
    %209 = arith.addf %208, %207 : vector<2x32xf32>
    %210 = arith.divf %208, %209 : vector<2x32xf32>
    %211 = vector.extract_strided_slice %198 {offsets = [0, 64], sizes = [2, 32], strides = [1, 1]} : vector<2x128xf32> to vector<2x32xf32>
    %212 = math.tanh %211 : vector<2x32xf32>
    %213 = vector.extract_strided_slice %198 {offsets = [0, 96], sizes = [2, 32], strides = [1, 1]} : vector<2x128xf32> to vector<2x32xf32>
    %214 = arith.negf %213 : vector<2x32xf32>
    %215 = math.exp %214 : vector<2x32xf32>
    %cst_94 = arith.constant 1.000000e+00 : f32
    %216 = vector.broadcast %cst_94 : f32 to vector<2x32xf32>
    %217 = arith.addf %216, %215 : vector<2x32xf32>
    %218 = arith.divf %216, %217 : vector<2x32xf32>
    %219 = arith.mulf %210, %174 : vector<2x32xf32>
    %220 = arith.mulf %204, %212 : vector<2x32xf32>
    %221 = arith.addf %219, %220 : vector<2x32xf32>
    %222 = math.tanh %221 : vector<2x32xf32>
    %223 = arith.mulf %218, %222 : vector<2x32xf32>
    %c4_95 = arith.constant 4 : index
    %c0_96 = arith.constant 0 : index
    %c0_97 = arith.constant 0 : index
    %224 = vector.load %arg2[%c4_95, %c0_96, %c0_97] : memref<8x2x32xf32, #tpu.memory_space<vmem>>, vector<1x2x32xf32>
    %225 = vector.shape_cast %224 : vector<1x2x32xf32> to vector<2x32xf32>
    %226 = arith.addf %223, %225 : vector<2x32xf32>
    %c4_98 = arith.constant 4 : index
    %c0_99 = arith.constant 0 : index
    %c0_100 = arith.constant 0 : index
    %227 = vector.load %arg5[%c4_98, %c0_99, %c0_100] : memref<8x2x32xf32, #tpu.memory_space<vmem>>, vector<1x2x32xf32>
    %228 = vector.shape_cast %227 : vector<1x2x32xf32> to vector<2x32xf32>
    %229 = vector.shape_cast %226 : vector<2x32xf32> to vector<1x2x32xf32>
    tpu.vector_store %arg5[%c4_98, %c0_99, %c0_100], %229 {strides = array<i32>} : memref<8x2x32xf32, #tpu.memory_space<vmem>>, vector<1x2x32xf32>,
    %c4_101 = arith.constant 4 : index
    %c0_102 = arith.constant 0 : index
    %c0_103 = arith.constant 0 : index
    %230 = vector.load %arg3[%c4_101, %c0_102, %c0_103] : memref<8x2x32xi32, #tpu.memory_space<vmem>>, vector<1x2x32xi32>
    %231 = vector.shape_cast %230 : vector<1x2x32xi32> to vector<2x32xi32>
    %c858993459_i32_104 = arith.constant 858993459 : i32
    %232 = vector.broadcast %c858993459_i32_104 : i32 to vector<2x32xi32>
    %233 = arith.cmpi uge, %231, %232 : vector<2x32xi32>
    %cst_105 = arith.constant 1.250000e+00 : f32
    %234 = vector.broadcast %cst_105 : f32 to vector<2x32xf32>
    %235 = arith.mulf %226, %234 : vector<2x32xf32>
    %cst_106 = arith.constant 0.000000e+00 : f32
    %236 = vector.broadcast %cst_106 : f32 to vector<2x32xf32>
    %237 = arith.select %233, %235, %236 : vector<2x32xi1>, vector<2x32xf32>
    %c4_107 = arith.constant 4 : index
    %c0_108 = arith.constant 0 : index
    %c0_109 = arith.constant 0 : index
    %238 = vector.load %arg6[%c4_107, %c0_108, %c0_109] : memref<8x2x32xf32, #tpu.memory_space<vmem>>, vector<1x2x32xf32>
    %239 = vector.shape_cast %238 : vector<1x2x32xf32> to vector<2x32xf32>
    %240 = vector.shape_cast %237 : vector<2x32xf32> to vector<1x2x32xf32>
    tpu.vector_store %arg6[%c4_107, %c0_108, %c0_109], %240 {strides = array<i32>} : memref<8x2x32xf32, #tpu.memory_space<vmem>>, vector<1x2x32xf32>,
    %c5 = arith.constant 5 : index
    %c0_110 = arith.constant 0 : index
    %c0_111 = arith.constant 0 : index
    %241 = vector.load %arg1[%c5, %c0_110, %c0_111] : memref<8x2x128xf32, #tpu.memory_space<vmem>>, vector<1x2x128xf32>
    %242 = vector.shape_cast %241 : vector<1x2x128xf32> to vector<2x128xf32>
    %243 = arith.truncf %223 : vector<2x32xf32> to vector<2x32xbf16>
    %cst_112 = arith.constant dense<0.000000e+00> : vector<2x128xf32>
    %244 = tpu.matmul %243, %5, %cst_112 {dimension_numbers = #tpu.dot_dimension_numbers<[1], [0], [0], [1], [0, 0, 1, 1], [], []>} : vector<2x32xbf16>, vector<32x128xbf16>, vector<2x128xf32> -> vector<2x128xf32>
    %245 = arith.addf %242, %244 : vector<2x128xf32>
    %246 = vector.extract_strided_slice %245 {offsets = [0, 0], sizes = [2, 32], strides = [1, 1]} : vector<2x128xf32> to vector<2x32xf32>
    %247 = arith.negf %246 : vector<2x32xf32>
    %248 = math.exp %247 : vector<2x32xf32>
    %cst_113 = arith.constant 1.000000e+00 : f32
    %249 = vector.broadcast %cst_113 : f32 to vector<2x32xf32>
    %250 = arith.addf %249, %248 : vector<2x32xf32>
    %251 = arith.divf %249, %250 : vector<2x32xf32>
    %252 = vector.extract_strided_slice %245 {offsets = [0, 32], sizes = [2, 32], strides = [1, 1]} : vector<2x128xf32> to vector<2x32xf32>
    %253 = arith.negf %252 : vector<2x32xf32>
    %254 = math.exp %253 : vector<2x32xf32>
    %cst_114 = arith.constant 1.000000e+00 : f32
    %255 = vector.broadcast %cst_114 : f32 to vector<2x32xf32>
    %256 = arith.addf %255, %254 : vector<2x32xf32>
    %257 = arith.divf %255, %256 : vector<2x32xf32>
    %258 = vector.extract_strided_slice %245 {offsets = [0, 64], sizes = [2, 32], strides = [1, 1]} : vector<2x128xf32> to vector<2x32xf32>
    %259 = math.tanh %258 : vector<2x32xf32>
    %260 = vector.extract_strided_slice %245 {offsets = [0, 96], sizes = [2, 32], strides = [1, 1]} : vector<2x128xf32> to vector<2x32xf32>
    %261 = arith.negf %260 : vector<2x32xf32>
    %262 = math.exp %261 : vector<2x32xf32>
    %cst_115 = arith.constant 1.000000e+00 : f32
    %263 = vector.broadcast %cst_115 : f32 to vector<2x32xf32>
    %264 = arith.addf %263, %262 : vector<2x32xf32>
    %265 = arith.divf %263, %264 : vector<2x32xf32>
    %266 = arith.mulf %257, %221 : vector<2x32xf32>
    %267 = arith.mulf %251, %259 : vector<2x32xf32>
    %268 = arith.addf %266, %267 : vector<2x32xf32>
    %269 = math.tanh %268 : vector<2x32xf32>
    %270 = arith.mulf %265, %269 : vector<2x32xf32>
    %c5_116 = arith.constant 5 : index
    %c0_117 = arith.constant 0 : index
    %c0_118 = arith.constant 0 : index
    %271 = vector.load %arg2[%c5_116, %c0_117, %c0_118] : memref<8x2x32xf32, #tpu.memory_space<vmem>>, vector<1x2x32xf32>
    %272 = vector.shape_cast %271 : vector<1x2x32xf32> to vector<2x32xf32>
    %273 = arith.addf %270, %272 : vector<2x32xf32>
    %c5_119 = arith.constant 5 : index
    %c0_120 = arith.constant 0 : index
    %c0_121 = arith.constant 0 : index
    %274 = vector.load %arg5[%c5_119, %c0_120, %c0_121] : memref<8x2x32xf32, #tpu.memory_space<vmem>>, vector<1x2x32xf32>
    %275 = vector.shape_cast %274 : vector<1x2x32xf32> to vector<2x32xf32>
    %276 = vector.shape_cast %273 : vector<2x32xf32> to vector<1x2x32xf32>
    tpu.vector_store %arg5[%c5_119, %c0_120, %c0_121], %276 {strides = array<i32>} : memref<8x2x32xf32, #tpu.memory_space<vmem>>, vector<1x2x32xf32>,
    %c5_122 = arith.constant 5 : index
    %c0_123 = arith.constant 0 : index
    %c0_124 = arith.constant 0 : index
    %277 = vector.load %arg3[%c5_122, %c0_123, %c0_124] : memref<8x2x32xi32, #tpu.memory_space<vmem>>, vector<1x2x32xi32>
    %278 = vector.shape_cast %277 : vector<1x2x32xi32> to vector<2x32xi32>
    %c858993459_i32_125 = arith.constant 858993459 : i32
    %279 = vector.broadcast %c858993459_i32_125 : i32 to vector<2x32xi32>
    %280 = arith.cmpi uge, %278, %279 : vector<2x32xi32>
    %cst_126 = arith.constant 1.250000e+00 : f32
    %281 = vector.broadcast %cst_126 : f32 to vector<2x32xf32>
    %282 = arith.mulf %273, %281 : vector<2x32xf32>
    %cst_127 = arith.constant 0.000000e+00 : f32
    %283 = vector.broadcast %cst_127 : f32 to vector<2x32xf32>
    %284 = arith.select %280, %282, %283 : vector<2x32xi1>, vector<2x32xf32>
    %c5_128 = arith.constant 5 : index
    %c0_129 = arith.constant 0 : index
    %c0_130 = arith.constant 0 : index
    %285 = vector.load %arg6[%c5_128, %c0_129, %c0_130] : memref<8x2x32xf32, #tpu.memory_space<vmem>>, vector<1x2x32xf32>
    %286 = vector.shape_cast %285 : vector<1x2x32xf32> to vector<2x32xf32>
    %287 = vector.shape_cast %284 : vector<2x32xf32> to vector<1x2x32xf32>
    tpu.vector_store %arg6[%c5_128, %c0_129, %c0_130], %287 {strides = array<i32>} : memref<8x2x32xf32, #tpu.memory_space<vmem>>, vector<1x2x32xf32>,
    %c6 = arith.constant 6 : index
    %c0_131 = arith.constant 0 : index
    %c0_132 = arith.constant 0 : index
    %288 = vector.load %arg1[%c6, %c0_131, %c0_132] : memref<8x2x128xf32, #tpu.memory_space<vmem>>, vector<1x2x128xf32>
    %289 = vector.shape_cast %288 : vector<1x2x128xf32> to vector<2x128xf32>
    %290 = arith.truncf %270 : vector<2x32xf32> to vector<2x32xbf16>
    %cst_133 = arith.constant dense<0.000000e+00> : vector<2x128xf32>
    %291 = tpu.matmul %290, %5, %cst_133 {dimension_numbers = #tpu.dot_dimension_numbers<[1], [0], [0], [1], [0, 0, 1, 1], [], []>} : vector<2x32xbf16>, vector<32x128xbf16>, vector<2x128xf32> -> vector<2x128xf32>
    %292 = arith.addf %289, %291 : vector<2x128xf32>
    %293 = vector.extract_strided_slice %292 {offsets = [0, 0], sizes = [2, 32], strides = [1, 1]} : vector<2x128xf32> to vector<2x32xf32>
    %294 = arith.negf %293 : vector<2x32xf32>
    %295 = math.exp %294 : vector<2x32xf32>
    %cst_134 = arith.constant 1.000000e+00 : f32
    %296 = vector.broadcast %cst_134 : f32 to vector<2x32xf32>
    %297 = arith.addf %296, %295 : vector<2x32xf32>
    %298 = arith.divf %296, %297 : vector<2x32xf32>
    %299 = vector.extract_strided_slice %292 {offsets = [0, 32], sizes = [2, 32], strides = [1, 1]} : vector<2x128xf32> to vector<2x32xf32>
    %300 = arith.negf %299 : vector<2x32xf32>
    %301 = math.exp %300 : vector<2x32xf32>
    %cst_135 = arith.constant 1.000000e+00 : f32
    %302 = vector.broadcast %cst_135 : f32 to vector<2x32xf32>
    %303 = arith.addf %302, %301 : vector<2x32xf32>
    %304 = arith.divf %302, %303 : vector<2x32xf32>
    %305 = vector.extract_strided_slice %292 {offsets = [0, 64], sizes = [2, 32], strides = [1, 1]} : vector<2x128xf32> to vector<2x32xf32>
    %306 = math.tanh %305 : vector<2x32xf32>
    %307 = vector.extract_strided_slice %292 {offsets = [0, 96], sizes = [2, 32], strides = [1, 1]} : vector<2x128xf32> to vector<2x32xf32>
    %308 = arith.negf %307 : vector<2x32xf32>
    %309 = math.exp %308 : vector<2x32xf32>
    %cst_136 = arith.constant 1.000000e+00 : f32
    %310 = vector.broadcast %cst_136 : f32 to vector<2x32xf32>
    %311 = arith.addf %310, %309 : vector<2x32xf32>
    %312 = arith.divf %310, %311 : vector<2x32xf32>
    %313 = arith.mulf %304, %268 : vector<2x32xf32>
    %314 = arith.mulf %298, %306 : vector<2x32xf32>
    %315 = arith.addf %313, %314 : vector<2x32xf32>
    %316 = math.tanh %315 : vector<2x32xf32>
    %317 = arith.mulf %312, %316 : vector<2x32xf32>
    %c6_137 = arith.constant 6 : index
    %c0_138 = arith.constant 0 : index
    %c0_139 = arith.constant 0 : index
    %318 = vector.load %arg2[%c6_137, %c0_138, %c0_139] : memref<8x2x32xf32, #tpu.memory_space<vmem>>, vector<1x2x32xf32>
    %319 = vector.shape_cast %318 : vector<1x2x32xf32> to vector<2x32xf32>
    %320 = arith.addf %317, %319 : vector<2x32xf32>
    %c6_140 = arith.constant 6 : index
    %c0_141 = arith.constant 0 : index
    %c0_142 = arith.constant 0 : index
    %321 = vector.load %arg5[%c6_140, %c0_141, %c0_142] : memref<8x2x32xf32, #tpu.memory_space<vmem>>, vector<1x2x32xf32>
    %322 = vector.shape_cast %321 : vector<1x2x32xf32> to vector<2x32xf32>
    %323 = vector.shape_cast %320 : vector<2x32xf32> to vector<1x2x32xf32>
    tpu.vector_store %arg5[%c6_140, %c0_141, %c0_142], %323 {strides = array<i32>} : memref<8x2x32xf32, #tpu.memory_space<vmem>>, vector<1x2x32xf32>,
    %c6_143 = arith.constant 6 : index
    %c0_144 = arith.constant 0 : index
    %c0_145 = arith.constant 0 : index
    %324 = vector.load %arg3[%c6_143, %c0_144, %c0_145] : memref<8x2x32xi32, #tpu.memory_space<vmem>>, vector<1x2x32xi32>
    %325 = vector.shape_cast %324 : vector<1x2x32xi32> to vector<2x32xi32>
    %c858993459_i32_146 = arith.constant 858993459 : i32
    %326 = vector.broadcast %c858993459_i32_146 : i32 to vector<2x32xi32>
    %327 = arith.cmpi uge, %325, %326 : vector<2x32xi32>
    %cst_147 = arith.constant 1.250000e+00 : f32
    %328 = vector.broadcast %cst_147 : f32 to vector<2x32xf32>
    %329 = arith.mulf %320, %328 : vector<2x32xf32>
    %cst_148 = arith.constant 0.000000e+00 : f32
    %330 = vector.broadcast %cst_148 : f32 to vector<2x32xf32>
    %331 = arith.select %327, %329, %330 : vector<2x32xi1>, vector<2x32xf32>
    %c6_149 = arith.constant 6 : index
    %c0_150 = arith.constant 0 : index
    %c0_151 = arith.constant 0 : index
    %332 = vector.load %arg6[%c6_149, %c0_150, %c0_151] : memref<8x2x32xf32, #tpu.memory_space<vmem>>, vector<1x2x32xf32>
    %333 = vector.shape_cast %332 : vector<1x2x32xf32> to vector<2x32xf32>
    %334 = vector.shape_cast %331 : vector<2x32xf32> to vector<1x2x32xf32>
    tpu.vector_store %arg6[%c6_149, %c0_150, %c0_151], %334 {strides = array<i32>} : memref<8x2x32xf32, #tpu.memory_space<vmem>>, vector<1x2x32xf32>,
    %c7 = arith.constant 7 : index
    %c0_152 = arith.constant 0 : index
    %c0_153 = arith.constant 0 : index
    %335 = vector.load %arg1[%c7, %c0_152, %c0_153] : memref<8x2x128xf32, #tpu.memory_space<vmem>>, vector<1x2x128xf32>
    %336 = vector.shape_cast %335 : vector<1x2x128xf32> to vector<2x128xf32>
    %337 = arith.truncf %317 : vector<2x32xf32> to vector<2x32xbf16>
    %cst_154 = arith.constant dense<0.000000e+00> : vector<2x128xf32>
    %338 = tpu.matmul %337, %5, %cst_154 {dimension_numbers = #tpu.dot_dimension_numbers<[1], [0], [0], [1], [0, 0, 1, 1], [], []>} : vector<2x32xbf16>, vector<32x128xbf16>, vector<2x128xf32> -> vector<2x128xf32>
    %339 = arith.addf %336, %338 : vector<2x128xf32>
    %340 = vector.extract_strided_slice %339 {offsets = [0, 0], sizes = [2, 32], strides = [1, 1]} : vector<2x128xf32> to vector<2x32xf32>
    %341 = arith.negf %340 : vector<2x32xf32>
    %342 = math.exp %341 : vector<2x32xf32>
    %cst_155 = arith.constant 1.000000e+00 : f32
    %343 = vector.broadcast %cst_155 : f32 to vector<2x32xf32>
    %344 = arith.addf %343, %342 : vector<2x32xf32>
    %345 = arith.divf %343, %344 : vector<2x32xf32>
    %346 = vector.extract_strided_slice %339 {offsets = [0, 32], sizes = [2, 32], strides = [1, 1]} : vector<2x128xf32> to vector<2x32xf32>
    %347 = arith.negf %346 : vector<2x32xf32>
    %348 = math.exp %347 : vector<2x32xf32>
    %cst_156 = arith.constant 1.000000e+00 : f32
    %349 = vector.broadcast %cst_156 : f32 to vector<2x32xf32>
    %350 = arith.addf %349, %348 : vector<2x32xf32>
    %351 = arith.divf %349, %350 : vector<2x32xf32>
    %352 = vector.extract_strided_slice %339 {offsets = [0, 64], sizes = [2, 32], strides = [1, 1]} : vector<2x128xf32> to vector<2x32xf32>
    %353 = math.tanh %352 : vector<2x32xf32>
    %354 = vector.extract_strided_slice %339 {offsets = [0, 96], sizes = [2, 32], strides = [1, 1]} : vector<2x128xf32> to vector<2x32xf32>
    %355 = arith.negf %354 : vector<2x32xf32>
    %356 = math.exp %355 : vector<2x32xf32>
    %cst_157 = arith.constant 1.000000e+00 : f32
    %357 = vector.broadcast %cst_157 : f32 to vector<2x32xf32>
    %358 = arith.addf %357, %356 : vector<2x32xf32>
    %359 = arith.divf %357, %358 : vector<2x32xf32>
    %360 = arith.mulf %351, %315 : vector<2x32xf32>
    %361 = arith.mulf %345, %353 : vector<2x32xf32>
    %362 = arith.addf %360, %361 : vector<2x32xf32>
    %363 = math.tanh %362 : vector<2x32xf32>
    %364 = arith.mulf %359, %363 : vector<2x32xf32>
    %c7_158 = arith.constant 7 : index
    %c0_159 = arith.constant 0 : index
    %c0_160 = arith.constant 0 : index
    %365 = vector.load %arg2[%c7_158, %c0_159, %c0_160] : memref<8x2x32xf32, #tpu.memory_space<vmem>>, vector<1x2x32xf32>
    %366 = vector.shape_cast %365 : vector<1x2x32xf32> to vector<2x32xf32>
    %367 = arith.addf %364, %366 : vector<2x32xf32>
    %c7_161 = arith.constant 7 : index
    %c0_162 = arith.constant 0 : index
    %c0_163 = arith.constant 0 : index
    %368 = vector.load %arg5[%c7_161, %c0_162, %c0_163] : memref<8x2x32xf32, #tpu.memory_space<vmem>>, vector<1x2x32xf32>
    %369 = vector.shape_cast %368 : vector<1x2x32xf32> to vector<2x32xf32>
    %370 = vector.shape_cast %367 : vector<2x32xf32> to vector<1x2x32xf32>
    tpu.vector_store %arg5[%c7_161, %c0_162, %c0_163], %370 {strides = array<i32>} : memref<8x2x32xf32, #tpu.memory_space<vmem>>, vector<1x2x32xf32>,
    %c7_164 = arith.constant 7 : index
    %c0_165 = arith.constant 0 : index
    %c0_166 = arith.constant 0 : index
    %371 = vector.load %arg3[%c7_164, %c0_165, %c0_166] : memref<8x2x32xi32, #tpu.memory_space<vmem>>, vector<1x2x32xi32>
    %372 = vector.shape_cast %371 : vector<1x2x32xi32> to vector<2x32xi32>
    %c858993459_i32_167 = arith.constant 858993459 : i32
    %373 = vector.broadcast %c858993459_i32_167 : i32 to vector<2x32xi32>
    %374 = arith.cmpi uge, %372, %373 : vector<2x32xi32>
    %cst_168 = arith.constant 1.250000e+00 : f32
    %375 = vector.broadcast %cst_168 : f32 to vector<2x32xf32>
    %376 = arith.mulf %367, %375 : vector<2x32xf32>
    %cst_169 = arith.constant 0.000000e+00 : f32
    %377 = vector.broadcast %cst_169 : f32 to vector<2x32xf32>
    %378 = arith.select %374, %376, %377 : vector<2x32xi1>, vector<2x32xf32>
    %c7_170 = arith.constant 7 : index
    %c0_171 = arith.constant 0 : index
    %c0_172 = arith.constant 0 : index
    %379 = vector.load %arg6[%c7_170, %c0_171, %c0_172] : memref<8x2x32xf32, #tpu.memory_space<vmem>>, vector<1x2x32xf32>
    %380 = vector.shape_cast %379 : vector<1x2x32xf32> to vector<2x32xf32>
    %381 = vector.shape_cast %378 : vector<2x32xf32> to vector<1x2x32xf32>
    tpu.vector_store %arg6[%c7_170, %c0_171, %c0_172], %381 {strides = array<i32>} : memref<8x2x32xf32, #tpu.memory_space<vmem>>, vector<1x2x32xf32>,
    %c0_173 = arith.constant 0 : index
    %c0_174 = arith.constant 0 : index
    %382 = vector.load %arg7[%c0_173, %c0_174] : memref<2x32xf32, #tpu.memory_space<vmem>>, vector<2x32xf32>
    tpu.vector_store %arg7[%c0_173, %c0_174], %364 {strides = array<i32>} : memref<2x32xf32, #tpu.memory_space<vmem>>, vector<2x32xf32>,
    %c0_175 = arith.constant 0 : index
    %c0_176 = arith.constant 0 : index
    %383 = vector.load %arg8[%c0_175, %c0_176] : memref<2x32xf32, #tpu.memory_space<vmem>>, vector<2x32xf32>
    tpu.vector_store %arg8[%c0_175, %c0_176], %362 {strides = array<i32>} : memref<2x32xf32, #tpu.memory_space<vmem>>, vector<2x32xf32>,
    return
  }
  func.func @transform_0(%arg0: i32) -> (i32, i32, i32) {
    %c0_i32 = arith.constant 0 : i32
    %c0_i32_0 = arith.constant 0 : i32
    %c0_i32_1 = arith.constant 0 : i32
    return %arg0, %c0_i32, %c0_i32_0 : i32, i32, i32
  }
  func.func @transform_1(%arg0: i32) -> (i32, i32, i32) {
    %c0_i32 = arith.constant 0 : i32
    %c0_i32_0 = arith.constant 0 : i32
    %c0_i32_1 = arith.constant 0 : i32
    return %arg0, %c0_i32, %c0_i32_0 : i32, i32, i32
  }
  func.func @transform_2(%arg0: i32) -> (i32, i32, i32) {
    %c0_i32 = arith.constant 0 : i32
    %c0_i32_0 = arith.constant 0 : i32
    %c0_i32_1 = arith.constant 0 : i32
    return %arg0, %c0_i32, %c0_i32_0 : i32, i32, i32
  }
  func.func @transform_3(%arg0: i32) -> (i32, i32) {
    %c0_i32 = arith.constant 0 : i32
    %c0_i32_0 = arith.constant 0 : i32
    %c0_i32_1 = arith.constant 0 : i32
    return %c0_i32, %c0_i32_0 : i32, i32
  }
  func.func @transform_4(%arg0: i32) -> (i32, i32, i32) {
    %c0_i32 = arith.constant 0 : i32
    %c0_i32_0 = arith.constant 0 : i32
    %c0_i32_1 = arith.constant 0 : i32
    return %arg0, %c0_i32, %c0_i32_0 : i32, i32, i32
  }
  func.func @transform_5(%arg0: i32) -> (i32, i32, i32) {
    %c0_i32 = arith.constant 0 : i32
    %c0_i32_0 = arith.constant 0 : i32
    %c0_i32_1 = arith.constant 0 : i32
    return %arg0, %c0_i32, %c0_i32_0 : i32, i32, i32
  }
}

</mosaic_0001>

<bundles_post_ra>
// kernel: stage7_forward.1
= control target key start
LH: loop header
LB: loop body
LE: loop exit
PB: predicated region body
PF: predicated region fallthrough
CT: control target
= control target key end

     0   :  { %11 = vsyncpa [#allocation5], 0  ;;  %s1800_s0 = inlined_call_operand.vmem [shape: f32[16,2,128], index: 0, kind: input, shape index: {}]   ;;  %s1801_s1 = inlined_call_operand.vmem [shape: f32[16,2,32], index: 1, kind: input, shape index: {}]   ;;  %s1802_s2 = inlined_call_operand.vmem [shape: u32[16,2,32], index: 2, kind: input, shape index: {}]   ;;  %s1803_s3 = inlined_call_operand.vmem [shape: bf16[32,128], index: 3, kind: input, shape index: {}]   ;;  %s1804_s4 = inlined_call_operand.hbm [shape: f32[16,2,32], index: 4, kind: output, shape index: {0}]   ;;  %s1805_s5 = inlined_call_operand.hbm [shape: f32[16,2,32], index: 5, kind: output, shape index: {1}]  }
   0x1   :  { %13 = vsyncpa [#allocation5 + $0x1], 0 }
   0x2   :  { %14 = vsyncpa [#allocation7], 0 }
   0x3   :  { %16 = vsyncpa [#allocation7 + $0x1], 0  ;;  %s1497_s18 = smov 0   ;;  %s1499_s19 = smov 0  }
   0x4   :  { %s1501_s20 = smov 0   ;;  %s1503_s21 = smov 0  }
   0x5 LB: > { %s1518_s22 = sadd.s32 4294967295, %s1460_s21   ;;  %s1161_s23 = sadd.s32 4294967294, %s1460_s21   ;;  %s1460_s21 = sphi %s1503_s21, %s1811_s21   ;;  %s1456_s20 = sphi %s1501_s20, %s1810_s20   ;;  %s1452_s19 = sphi %s1499_s19, %s1809_s19   ;;  %s1448_s18 = sphi %s1497_s18, %s1808_s18  }
   0x6   : > { %s1522_s24 = sadd.s32 1, %s1460_s21   ;;  %s128_s25 = sadd.s32 1, %s1456_s20 }
   0x7   : > { %s125_s26 = ssub.s32 %s1460_s21, %s1522_s24  ;;  %p138_p0 = scmp.ne.s32.totalorder %s1456_s20, %s1452_s19 }
   0x8   : > { %p126_p1 = scmp.eq.s32.totalorder %s125_s26, 0  ;;  %p139_p2 = scmp.eq.s32.totalorder %s1518_s22, 1 }
   0x9   : > { %p144_p3 = scmp.ne.s32.totalorder %s1452_s19, %s1448_s18  ;;  %p145_p4 = scmp.eq.s32.totalorder %s1161_s23, 1 }
   0xa   : > { %s1533_s27 = scalar_select %p126_p1, %s1456_s20, %s128_s25  }
   0xb   : > { %p1535_p5 = por %p139_p2, %p138_p0  ;;  %p1539_p6 = por %p145_p4, %p144_p3 }
   0xc   : > { %p1164_p7 = scmp.ge.s32.totalorder %s1460_s21, 1  ;;  %p219_p8 = scmp.lt.s32.totalorder %s1460_s21, 3 }
   0xe   : > { %p220_p9 = pnand %p1164_p7, %p219_p8 }
   0xf   : > { %s1546_s30 = sand.u32 (!%p220_p9), 1, %s1452_s19   ;;  %s1167_s6 = sshll.u32 (!%p220_p9), %s1518_s22, 3 }
  0x10   : > { %223 = sbr.rel (%p220_p9) target bundleno = 4704 (0x1260), region = 36  ;;  %s1165_s7 = sshll.u32 (!%p220_p9), %s1546_s30, 4 }
  0x11   : > { %p263_p10 = scmp.lt.s32.totalorder (!%p220_p9), %s1167_s6, 15  ;;  %s1565_s23 = scalar_lea.vmem (!%p220_p9), [#allocation4], %s1165_s7 }
  0x12   : > { %s1567_s25 = scalar_lea.vmem (!%p220_p9), [#allocation6], %s1165_s7  ;;  %p1173_p11 = scmp.ne.s32.totalorder (!%p220_p9), %s1518_s22, 0 }
  0x15   : > { %s1813_s6 = smov (!%p263_p10, %s1167_s6), 15  ;;  %286 = sbr.rel (%p1173_p11) target bundleno = 29 (0x1d), region = 40 }
  0x16   : > { %s1168_s8 = sshll.u32 %s1813_s6, 1 }
  0x17   : > { %s1553_s11 = scalar_lea.vmem %s1800_s0, %s1168_s8  ;;  %s1558_s14 = scalar_lea.vmem %s1801_s1, %s1168_s8 }
  0x18   : > { %s1563_s17 = scalar_lea.vmem %s1802_s2, %s1168_s8 }
  0x1a   : > { %vm287_vm0 = vcmask 254976   ;;  %v1462_v0 = vmov 0.0  }
  0x1b   : > { %288 = vst.msk [vmem:[#allocation2] sm:$0x3] %vm287_vm0, %v1462_v0 }
  0x1c   : > { %289 = vst.msk [vmem:[#allocation3] sm:$0x3] %vm287_vm0, %v1462_v0 }
  0x1d PF: > { %v1250_v1 = vld [vmem:[%s1803_s3 + $0x8] sm:$0xff]  ;;  %v1249_v2 = vld [vmem:[%s1803_s3] sm:$0xff]  ;;  %vm310_vm1 = vcmask 261120   ;;  %s1463_s7 = smov 64   ;;  %s1464_s10 = smov 32  }
  0x1e   : > { %320 = vmatpush.bf16.msra.mxu0 %v1250_v1  ;;  %407 = vmatpush.bf16.msra.mxu1 %v1250_v1  ;;  %v296_v5 = vld [vmem:[%s1553_s11] sm:$0x3]  ;;  %v1185_v35 = vld [vmem:[%s1553_s11 + $0x2] sm:$0x3]  ;;  %v1193_v63 = vld [vmem:[%s1553_s11 + $0x4] sm:$0x3] }
  0x1f   : > { %493 = vmatpush.bf16.msra.mxu2 %v1250_v1  ;;  %579 = vmatpush.bf16.msra.mxu3 %v1250_v1  ;;  %s1465_s12 = smov 96   ;;  %s1039_s16 = sshll.u32 %s1567_s25, 4  ;;  %s1040_s16 = int_to_ptr.vmem [resolvable:$true] %s1039_s16 }
  0x20   : > { %s1010_s6 = scalar_lea.sflag [#allocation7], %s1546_s30 }
  0x22   : > { %v290_v3 = vld [vmem:[#allocation2] sm:$0x3]  ;;  %321 = vmatpush.bf16.msra.mxu0 %v1249_v2  ;;  %408 = vmatpush.bf16.msra.mxu1 %v1249_v2 }
  0x23   : > { %v297_v4 = vpack.c.bf16 %v290_v3, %v290_v3  ;;  %494 = vmatpush.bf16.msra.mxu2 %v1249_v2  ;;  %580 = vmatpush.bf16.msra.mxu3 %v1249_v2  ;;  %v291_v10 = vld [vmem:[#allocation3] sm:$0x3] }
  0x25   : > { %1182 = vmatmul.msk.bf16.vlgmr.msra.gmra.mxu0 %vm310_vm1, %v297_v4 }
  0x26   : > { %665 = vmatpush.bf16.msrb.mxu0 %v1250_v1  ;;  %751 = vmatpush.bf16.msrb.mxu1 %v1250_v1 }
  0x27   : > { %837 = vmatpush.bf16.msrb.mxu2 %v1250_v1  ;;  %923 = vmatpush.bf16.msrb.mxu3 %v1250_v1 }
  0x2a   : > { %666 = vmatpush.bf16.msrb.mxu0 %v1249_v2  ;;  %752 = vmatpush.bf16.msrb.mxu1 %v1249_v2 }
  0x2b   : > { %838 = vmatpush.bf16.msrb.mxu2 %v1249_v2  ;;  %924 = vmatpush.bf16.msrb.mxu3 %v1249_v2 }
  0xa2   : > { %v323_v6 = vpop.f32.mrf.mxu0 }
  0xa3   : > { %v327_v7 = vadd.f32 %v323_v6, %v296_v5 }
  0xa5   : > { %1302 = vtanh.f32 %v327_v7  ;;  %v1183_v11 = vmul.f32 -1.442695, %v327_v7 }
  0xa7   : > { %1304 = vpow2.f32 %v1183_v11 }
  0xaa   : > { %v325_v8 = vpop.f32.mrf.mxu0 }
  0xab   : > { %v1303_v9 = vpop.eup %1302 }
  0xac   : > { %354 = vrot.lane.b32.xlu0 %v1303_v9, %s1463_s7 }
  0xad   : > { %v1305_v12 = vpop.eup %1304 }
  0xae   : > { %v331_v13 = vadd.f32 1.0, %v1305_v12 }
  0xb0   : > { %1306 = vrcp.f32 %v331_v13  ;;  %v343_v19 = vand.u32 2147483648, %v331_v13  ;;  %vm337_vm3 = vweird.f32 %v331_v13  ;;  %v341_v20 = vand.u32 2147483647, %v331_v13 }
  0xb2   : > { %v344_v22 = vor.u32 1.1754944e-38, %v343_v19  ;;  %vm342_vm5 = vcmp.eq.f32.partialorder %v341_v20, 8.507059e+37 }
  0xb4   : > { %349 = vrot.lane.b32.xlu0 %v291_v10, %s1464_s10 }
  0xb6   : > { %v1307_v14 = vpop.eup %1306 }
  0xb7   : > { %v333_v15 = vmul.f32 %v1307_v14, %v331_v13  ;;  %vm338_vm2 = vweird.f32 %v1307_v14 }
  0xb8   : > { %vm339_vm4 = vmor %vm337_vm3, %vm338_vm2 }
  0xb9   : > { %v334_v16 = vsub.f32 1.0, %v333_v15 }
  0xbb   : > { %v335_v17 = vmul.f32 %v1307_v14, %v334_v16 }
  0xbd   : > { %v336_v18 = vadd.f32 %v1307_v14, %v335_v17 }
  0xbf   : > { %v340_v21 = vsel %vm339_vm4, %v1307_v14, %v336_v18 }
  0xc0   : > { %v345_v24 = vsel %vm342_vm5, %v344_v22, %v340_v21 }
 0x11e   : > { %v355_v23 = vpop.permute.xlu0 %354 }
 0x11f   : > { %v357_v25 = vmul.f32 %v355_v23, %v345_v24 }
 0x121   : > { %359 = vrot.lane.b32.xlu1 %v357_v25, %s1464_s10 }
 0x126   : > { %v350_v26 = vpop.permute.xlu0 %349 }
 0x127   : > { %v352_v27 = vmul.f32 %v350_v26, %v345_v24 }
 0x193   : > { %v360_v28 = vpop.permute.xlu1 %359 }
 0x194   : > { %v362_v29 = vadd.f32 %v360_v28, %v352_v27  ;;  %v1201_v27 = vld [vmem:[%s1553_s11 + $0x6] sm:$0x3] }
 0x196   : > { %1308 = vtanh.f32 %v362_v29 }
 0x19c   : > { %v1309_v30 = vpop.eup %1308 }
 0x19d   : > { %365 = vrot.lane.b32.xlu1 %v1309_v30, %s1463_s7 }
 0x20f   : > { %v366_v31 = vpop.permute.xlu1 %365 }
 0x210   : > { %v1582_v32 = vmul.f32 %v366_v31, %v345_v24 }
 0x212   : > { %v394_v33 = vpack.c.bf16 %v1582_v32, %v1582_v32 }
 0x214   : > { %396 = vrot.lane.b32.xlu2 %v394_v33, %s1464_s10 }
 0x26e   : > { %v397_v34 = vpop.permute.xlu2 %396 }
 0x26f   : > { %1186 = vmatmul.msk.bf16.vlgmr.msra.gmra.mxu1 %vm310_vm1, %v397_v34 }
 0x2ec   : > { %v410_v36 = vpop.f32.mrf.mxu1 }
 0x2ed   : > { %v414_v37 = vadd.f32 %v1185_v35, %v410_v36 }
 0x2ef   : > { %1310 = vtanh.f32 %v414_v37  ;;  %v1187_v40 = vmul.f32 -1.442695, %v414_v37 }
 0x2f1   : > { %1312 = vpow2.f32 %v1187_v40 }
 0x2f4   : > { %v412_v38 = vpop.f32.mrf.mxu1 }
 0x2f5   : > { %v1311_v39 = vpop.eup %1310 }
 0x2f6   : > { %437 = vrot.lane.b32.xlu2 %v1311_v39, %s1463_s7 }
 0x2f7   : > { %v1313_v41 = vpop.eup %1312 }
 0x2f8   : > { %v418_v42 = vadd.f32 1.0, %v1313_v41 }
 0x2fa   : > { %1314 = vrcp.f32 %v418_v42  ;;  %v430_v48 = vand.u32 2147483648, %v418_v42  ;;  %vm424_vm7 = vweird.f32 %v418_v42  ;;  %v428_v49 = vand.u32 2147483647, %v418_v42 }
 0x2fc   : > { %v431_v51 = vor.u32 1.1754944e-38, %v430_v48  ;;  %vm429_vm9 = vcmp.eq.f32.partialorder %v428_v49, 8.507059e+37 }
 0x300   : > { %v1315_v43 = vpop.eup %1314 }
 0x301   : > { %v420_v44 = vmul.f32 %v1315_v43, %v418_v42  ;;  %vm425_vm6 = vweird.f32 %v1315_v43 }
 0x302   : > { %vm426_vm8 = vmor %vm424_vm7, %vm425_vm6 }
 0x303   : > { %v421_v45 = vsub.f32 1.0, %v420_v44 }
 0x305   : > { %v422_v46 = vmul.f32 %v1315_v43, %v421_v45 }
 0x307   : > { %v423_v47 = vadd.f32 %v1315_v43, %v422_v46 }
 0x309   : > { %v427_v50 = vsel %vm426_vm8, %v1315_v43, %v423_v47 }
 0x30a   : > { %v432_v53 = vsel %vm429_vm9, %v431_v51, %v427_v50 }
 0x30b   : > { %v435_v55 = vmul.f32 %v432_v53, %v362_v29 }
 0x350   : > { %v438_v52 = vpop.permute.xlu2 %437 }
 0x351   : > { %v440_v54 = vmul.f32 %v438_v52, %v432_v53 }
 0x353   : > { %442 = vrot.lane.b32.xlu0 %v440_v54, %s1464_s10 }
 0x3c5   : > { %v443_v56 = vpop.permute.xlu0 %442 }
 0x3c6   : > { %v445_v57 = vadd.f32 %v443_v56, %v435_v55  ;;  %v1209_v56 = vld [vmem:[%s1553_s11 + $0x8] sm:$0x3] }
 0x3c8   : > { %1316 = vtanh.f32 %v445_v57 }
 0x3ce   : > { %v1317_v58 = vpop.eup %1316 }
 0x3cf   : > { %448 = vrot.lane.b32.xlu1 %v1317_v58, %s1463_s7 }
 0x441   : > { %v449_v59 = vpop.permute.xlu1 %448 }
 0x442   : > { %v1592_v60 = vmul.f32 %v449_v59, %v432_v53 }
 0x444   : > { %v480_v61 = vpack.c.bf16 %v1592_v60, %v1592_v60 }
 0x446   : > { %482 = vrot.lane.b32.xlu2 %v480_v61, %s1464_s10 }
 0x4a0   : > { %v483_v62 = vpop.permute.xlu2 %482 }
 0x4a1   : > { %1194 = vmatmul.msk.bf16.vlgmr.msra.gmra.mxu2 %vm310_vm1, %v483_v62 }
 0x524   : > { %v496_v0 = vpop.f32.mrf.mxu2 }
 0x525   : > { %v500_v1 = vadd.f32 %v1193_v63, %v496_v0 }
 0x527   : > { %1318 = vtanh.f32 %v500_v1  ;;  %v1195_v4 = vmul.f32 -1.442695, %v500_v1 }
 0x529   : > { %1320 = vpow2.f32 %v1195_v4 }
 0x52c   : > { %v498_v2 = vpop.f32.mrf.mxu2 }
 0x52d   : > { %v1319_v3 = vpop.eup %1318 }
 0x52e   : > { %523 = vrot.lane.b32.xlu0 %v1319_v3, %s1463_s7 }
 0x52f   : > { %v1321_v5 = vpop.eup %1320 }
 0x530   : > { %v504_v6 = vadd.f32 1.0, %v1321_v5 }
 0x532   : > { %1322 = vrcp.f32 %v504_v6  ;;  %v516_v12 = vand.u32 2147483648, %v504_v6  ;;  %vm510_vm11 = vweird.f32 %v504_v6  ;;  %v514_v13 = vand.u32 2147483647, %v504_v6 }
 0x534   : > { %v517_v15 = vor.u32 1.1754944e-38, %v516_v12  ;;  %vm515_vm13 = vcmp.eq.f32.partialorder %v514_v13, 8.507059e+37 }
 0x538   : > { %v1323_v7 = vpop.eup %1322 }
 0x539   : > { %v506_v8 = vmul.f32 %v1323_v7, %v504_v6  ;;  %vm511_vm10 = vweird.f32 %v1323_v7 }
 0x53a   : > { %vm512_vm12 = vmor %vm510_vm11, %vm511_vm10 }
 0x53b   : > { %v507_v9 = vsub.f32 1.0, %v506_v8 }
 0x53d   : > { %v508_v10 = vmul.f32 %v1323_v7, %v507_v9 }
 0x53f   : > { %v509_v11 = vadd.f32 %v1323_v7, %v508_v10 }
 0x541   : > { %v513_v14 = vsel %vm512_vm12, %v1323_v7, %v509_v11 }
 0x542   : > { %v518_v17 = vsel %vm515_vm13, %v517_v15, %v513_v14 }
 0x543   : > { %v521_v19 = vmul.f32 %v518_v17, %v445_v57 }
 0x5a0   : > { %v524_v16 = vpop.permute.xlu0 %523 }
 0x5a1   : > { %v526_v18 = vmul.f32 %v524_v16, %v518_v17 }
 0x5a3   : > { %528 = vrot.lane.b32.xlu1 %v526_v18, %s1464_s10 }
 0x615   : > { %v529_v20 = vpop.permute.xlu1 %528 }
 0x616   : > { %v531_v21 = vadd.f32 %v529_v20, %v521_v19 }
 0x618   : > { %1324 = vtanh.f32 %v531_v21 }
 0x61e   : > { %v1325_v22 = vpop.eup %1324 }
 0x61f   : > { %534 = vrot.lane.b32.xlu2 %v1325_v22, %s1463_s7 }
 0x679   : > { %v535_v23 = vpop.permute.xlu2 %534 }
 0x67a   : > { %v1602_v24 = vmul.f32 %v535_v23, %v518_v17 }
 0x67c   : > { %v566_v25 = vpack.c.bf16 %v1602_v24, %v1602_v24 }
 0x67e   : > { %568 = vrot.lane.b32.xlu0 %v566_v25, %s1464_s10 }
 0x6f0   : > { %v569_v26 = vpop.permute.xlu0 %568 }
 0x6f1   : > { %1202 = vmatmul.msk.bf16.vlgmr.msra.gmra.mxu3 %vm310_vm1, %v569_v26 }
 0x774   : > { %v582_v28 = vpop.f32.mrf.mxu3 }
 0x775   : > { %v586_v29 = vadd.f32 %v1201_v27, %v582_v28 }
 0x777   : > { %1326 = vtanh.f32 %v586_v29  ;;  %v1203_v33 = vmul.f32 -1.442695, %v586_v29 }
 0x779   : > { %1328 = vpow2.f32 %v1203_v33 }
 0x77c   : > { %v584_v30 = vpop.f32.mrf.mxu3 }
 0x77d   : > { %v1327_v31 = vpop.eup %1326 }
 0x77e   : > { %609 = vrot.lane.b32.xlu1 %v1327_v31, %s1463_s7 }
 0x77f   : > { %v1329_v34 = vpop.eup %1328 }
 0x780   : > { %v590_v35 = vadd.f32 1.0, %v1329_v34 }
 0x782   : > { %1330 = vrcp.f32 %v590_v35  ;;  %v602_v41 = vand.u32 2147483648, %v590_v35  ;;  %vm596_vm15 = vweird.f32 %v590_v35  ;;  %v600_v42 = vand.u32 2147483647, %v590_v35 }
 0x784   : > { %v603_v44 = vor.u32 1.1754944e-38, %v602_v41  ;;  %vm601_vm2 = vcmp.eq.f32.partialorder %v600_v42, 8.507059e+37 }
 0x788   : > { %v1331_v36 = vpop.eup %1330 }
 0x789   : > { %v592_v37 = vmul.f32 %v1331_v36, %v590_v35  ;;  %vm597_vm14 = vweird.f32 %v1331_v36 }
 0x78a   : > { %vm598_vm0 = vmor %vm596_vm15, %vm597_vm14 }
 0x78b   : > { %v593_v38 = vsub.f32 1.0, %v592_v37 }
 0x78d   : > { %v594_v39 = vmul.f32 %v1331_v36, %v593_v38 }
 0x78f   : > { %v595_v40 = vadd.f32 %v1331_v36, %v594_v39 }
 0x791   : > { %v599_v43 = vsel %vm598_vm0, %v1331_v36, %v595_v40 }
 0x792   : > { %v604_v46 = vsel %vm601_vm2, %v603_v44, %v599_v43 }
 0x793   : > { %v607_v48 = vmul.f32 %v604_v46, %v531_v21  ;;  %v1217_v21 = vld [vmem:[%s1553_s11 + $0xa] sm:$0x3] }
 0x7f0   : > { %v610_v45 = vpop.permute.xlu1 %609 }
 0x7f1   : > { %v612_v47 = vmul.f32 %v610_v45, %v604_v46 }
 0x7f3   : > { %614 = vrot.lane.b32.xlu2 %v612_v47, %s1464_s10 }
 0x84d   : > { %v615_v49 = vpop.permute.xlu2 %614 }
 0x84e   : > { %v617_v50 = vadd.f32 %v615_v49, %v607_v48 }
 0x850   : > { %1332 = vtanh.f32 %v617_v50 }
 0x856   : > { %v1333_v51 = vpop.eup %1332 }
 0x857   : > { %620 = vrot.lane.b32.xlu0 %v1333_v51, %s1463_s7  ;;  %v1225_v51 = vld [vmem:[%s1553_s11 + $0xc] sm:$0x3] }
 0x8c9   : > { %v621_v52 = vpop.permute.xlu0 %620 }
 0x8ca   : > { %v1612_v53 = vmul.f32 %v621_v52, %v604_v46 }
 0x8cc   : > { %v652_v54 = vpack.c.bf16 %v1612_v53, %v1612_v53 }
 0x8ce   : > { %654 = vrot.lane.b32.xlu1 %v652_v54, %s1464_s10 }
 0x940   : > { %v655_v55 = vpop.permute.xlu1 %654 }
 0x941   : > { %1210 = vmatmul.msk.bf16.vlgmr.msrb.gmra.mxu0 %vm310_vm1, %v655_v55 }
 0x9be   : > { %v668_v57 = vpop.f32.mrf.mxu0 }
 0x9bf   : > { %v672_v58 = vadd.f32 %v1209_v56, %v668_v57 }
 0x9c1   : > { %1334 = vtanh.f32 %v672_v58  ;;  %v1211_v62 = vmul.f32 -1.442695, %v672_v58 }
 0x9c3   : > { %1336 = vpow2.f32 %v1211_v62 }
 0x9c6   : > { %v670_v59 = vpop.f32.mrf.mxu0 }
 0x9c7   : > { %v1335_v61 = vpop.eup %1334 }
 0x9c8   : > { %695 = vrot.lane.b32.xlu2 %v1335_v61, %s1463_s7 }
 0x9c9   : > { %v1337_v63 = vpop.eup %1336 }
 0x9ca   : > { %v676_v0 = vadd.f32 1.0, %v1337_v63 }
 0x9cc   : > { %1338 = vrcp.f32 %v676_v0  ;;  %v688_v6 = vand.u32 2147483648, %v676_v0  ;;  %vm682_vm4 = vweird.f32 %v676_v0  ;;  %v686_v7 = vand.u32 2147483647, %v676_v0 }
 0x9ce   : > { %v689_v9 = vor.u32 1.1754944e-38, %v688_v6  ;;  %vm687_vm6 = vcmp.eq.f32.partialorder %v686_v7, 8.507059e+37 }
 0x9d2   : > { %v1339_v1 = vpop.eup %1338 }
 0x9d3   : > { %v678_v2 = vmul.f32 %v1339_v1, %v676_v0  ;;  %vm683_vm3 = vweird.f32 %v1339_v1 }
 0x9d4   : > { %vm684_vm5 = vmor %vm682_vm4, %vm683_vm3  ;;  %vm379_vm4 = vcmask 254976  }
 0x9d5   : > { %v679_v3 = vsub.f32 1.0, %v678_v2 }
 0x9d7   : > { %v680_v4 = vmul.f32 %v1339_v1, %v679_v3 }
 0x9d9   : > { %v681_v5 = vadd.f32 %v1339_v1, %v680_v4 }
 0x9db   : > { %v685_v8 = vsel %vm684_vm5, %v1339_v1, %v681_v5 }
 0x9dc   : > { %v690_v11 = vsel %vm687_vm6, %v689_v9, %v685_v8 }
 0x9dd   : > { %v693_v13 = vmul.f32 %v690_v11, %v617_v50 }
 0xa22   : > { %v696_v10 = vpop.permute.xlu2 %695 }
 0xa23   : > { %v698_v12 = vmul.f32 %v696_v10, %v690_v11 }
 0xa25   : > { %700 = vrot.lane.b32.xlu0 %v698_v12, %s1464_s10 }
 0xa97   : > { %v701_v14 = vpop.permute.xlu0 %700 }
 0xa98   : > { %v703_v15 = vadd.f32 %v701_v14, %v693_v13 }
 0xa9a   : > { %1340 = vtanh.f32 %v703_v15 }
 0xaa0   : > { %v1341_v16 = vpop.eup %1340 }
 0xaa1   : > { %706 = vrot.lane.b32.xlu1 %v1341_v16, %s1463_s7  ;;  %v1196_v16 = vld [vmem:[%s1558_s14 + $0x4] sm:$0x3] }
 0xb13   : > { %v707_v17 = vpop.permute.xlu1 %706 }
 0xb14   : > { %v1622_v18 = vmul.f32 %v707_v17, %v690_v11  ;;  %v1220_v17 = vld [vmem:[%s1558_s14 + $0xa] sm:$0x3] }
 0xb16   : > { %v738_v19 = vpack.c.bf16 %v1622_v18, %v1622_v18 }
 0xb18   : > { %740 = vrot.lane.b32.xlu2 %v738_v19, %s1464_s10 }
 0xb72   : > { %v741_v20 = vpop.permute.xlu2 %740 }
 0xb73   : > { %1218 = vmatmul.msk.bf16.vlgmr.msrb.gmra.mxu1 %vm310_vm1, %v741_v20  ;;  %v1233_v20 = vld [vmem:[%s1553_s11 + $0xe] sm:$0x3]  ;;  %s1251_s11 = sshll.u32 %s1518_s22, 4 }
 0xb74   : > { %s1038_s15 = scalar_lea.hbm %s1805_s5, %s1251_s11 }
 0xb75   : > { %s1041_s26 = sshll.u32 %s1038_s15, 4  ;;  %s1042_s26 = int_to_ptr.hbm [resolvable:$true] %s1041_s26 }
 0xb76   : > { %s1380_s9 = sshra.s32 %s1042_s26, 4  ;;  %s1381_s9 = int_to_ptr.hbm [resolvable:$true] %s1380_s9 }
 0xb77   : > { %p1387_p1 = scmp.lt.s32.totalorder %s1381_s9, %s1805_s5 }
 0xbf0   : > { %v754_v22 = vpop.f32.mrf.mxu1 }
 0xbf1   : > { %v758_v23 = vadd.f32 %v1217_v21, %v754_v22 }
 0xbf3   : > { %1342 = vtanh.f32 %v758_v23  ;;  %v1219_v27 = vmul.f32 -1.442695, %v758_v23 }
 0xbf5   : > { %1344 = vpow2.f32 %v1219_v27  ;;  %v1204_v27 = vld [vmem:[%s1558_s14 + $0x6] sm:$0x3] }
 0xbf8   : > { %v756_v25 = vpop.f32.mrf.mxu1 }
 0xbf9   : > { %v1343_v26 = vpop.eup %1342 }
 0xbfa   : > { %781 = vrot.lane.b32.xlu0 %v1343_v26, %s1463_s7  ;;  %v369_v26 = vld [vmem:[%s1558_s14] sm:$0x3] }
 0xbfb   : > { %v1345_v28 = vpop.eup %1344 }
 0xbfc   : > { %v762_v29 = vadd.f32 1.0, %v1345_v28  ;;  %v1228_v28 = vld [vmem:[%s1558_s14 + $0xc] sm:$0x3] }
 0xbfe   : > { %1346 = vrcp.f32 %v762_v29  ;;  %v774_v36 = vand.u32 2147483648, %v762_v29  ;;  %vm768_vm8 = vweird.f32 %v762_v29  ;;  %v772_v37 = vand.u32 2147483647, %v762_v29 }
 0xc00   : > { %v775_v39 = vor.u32 1.1754944e-38, %v774_v36  ;;  %vm773_vm10 = vcmp.eq.f32.partialorder %v772_v37, 8.507059e+37 }
 0xc04   : > { %v1347_v30 = vpop.eup %1346 }
 0xc05   : > { %v764_v31 = vmul.f32 %v1347_v30, %v762_v29  ;;  %vm769_vm7 = vweird.f32 %v1347_v30 }
 0xc06   : > { %vm770_vm9 = vmor %vm768_vm8, %vm769_vm7 }
 0xc07   : > { %v765_v33 = vsub.f32 1.0, %v764_v31 }
 0xc09   : > { %v766_v34 = vmul.f32 %v1347_v30, %v765_v33 }
 0xc0b   : > { %v767_v35 = vadd.f32 %v1347_v30, %v766_v34 }
 0xc0d   : > { %v771_v38 = vsel %vm770_vm9, %v1347_v30, %v767_v35 }
 0xc0e   : > { %v776_v41 = vsel %vm773_vm10, %v775_v39, %v771_v38 }
 0xc0f   : > { %v779_v43 = vmul.f32 %v776_v41, %v703_v15 }
 0xc6c   : > { %v782_v40 = vpop.permute.xlu0 %781 }
 0xc6d   : > { %v784_v42 = vmul.f32 %v782_v40, %v776_v41 }
 0xc6f   : > { %786 = vrot.lane.b32.xlu1 %v784_v42, %s1464_s10 }
 0xce1   : > { %v787_v44 = vpop.permute.xlu1 %786 }
 0xce2   : > { %v789_v45 = vadd.f32 %v787_v44, %v779_v43 }
 0xce4   : > { %1348 = vtanh.f32 %v789_v45 }
 0xcea   : > { %v1349_v46 = vpop.eup %1348 }
 0xceb   : > { %792 = vrot.lane.b32.xlu2 %v1349_v46, %s1463_s7  ;;  %v1188_v46 = vld [vmem:[%s1558_s14 + $0x2] sm:$0x3] }
 0xd45   : > { %v793_v47 = vpop.permute.xlu2 %792 }
 0xd46   : > { %v1632_v48 = vmul.f32 %v793_v47, %v776_v41 }
 0xd48   : > { %v824_v49 = vpack.c.bf16 %v1632_v48, %v1632_v48 }
 0xd4a   : > { %826 = vrot.lane.b32.xlu0 %v824_v49, %s1464_s10 }
 0xdbc   : > { %v827_v50 = vpop.permute.xlu0 %826 }
 0xdbd   : > { %1226 = vmatmul.msk.bf16.vlgmr.msrb.gmra.mxu2 %vm310_vm1, %v827_v50 }
 0xe40   : > { %v840_v52 = vpop.f32.mrf.mxu2 }
 0xe41   : > { %v844_v54 = vadd.f32 %v1225_v51, %v840_v52  ;;  %v1212_v51 = vld [vmem:[%s1558_s14 + $0x8] sm:$0x3] }
 0xe43   : > { %1350 = vtanh.f32 %v844_v54  ;;  %v1227_v57 = vmul.f32 -1.442695, %v844_v54 }
 0xe45   : > { %1352 = vpow2.f32 %v1227_v57 }
 0xe48   : > { %v842_v55 = vpop.f32.mrf.mxu2 }
 0xe49   : > { %v1351_v56 = vpop.eup %1350  ;;  %v1236_v55 = vld [vmem:[%s1558_s14 + $0xe] sm:$0x3] }
 0xe4a   : > { %867 = vrot.lane.b32.xlu1 %v1351_v56, %s1463_s7 }
 0xe4b   : > { %v1353_v58 = vpop.eup %1352 }
 0xe4c   : > { %v848_v59 = vadd.f32 1.0, %v1353_v58 }
 0xe4e   : > { %1354 = vrcp.f32 %v848_v59  ;;  %v860_v2 = vand.u32 2147483648, %v848_v59  ;;  %vm854_vm12 = vweird.f32 %v848_v59  ;;  %v858_v3 = vand.u32 2147483647, %v848_v59 }
 0xe50   : > { %v861_v5 = vor.u32 1.1754944e-38, %v860_v2  ;;  %vm859_vm14 = vcmp.eq.f32.partialorder %v858_v3, 8.507059e+37 }
 0xe54   : > { %v1355_v61 = vpop.eup %1354 }
 0xe55   : > { %v850_v62 = vmul.f32 %v1355_v61, %v848_v59  ;;  %vm855_vm11 = vweird.f32 %v1355_v61 }
 0xe56   : > { %vm856_vm13 = vmor %vm854_vm12, %vm855_vm11 }
 0xe57   : > { %v851_v63 = vsub.f32 1.0, %v850_v62 }
 0xe59   : > { %v852_v0 = vmul.f32 %v1355_v61, %v851_v63 }
 0xe5b   : > { %v853_v1 = vadd.f32 %v1355_v61, %v852_v0 }
 0xe5d   : > { %v857_v4 = vsel %vm856_vm13, %v1355_v61, %v853_v1 }
 0xe5e   : > { %v862_v7 = vsel %vm859_vm14, %v861_v5, %v857_v4 }
 0xe5f   : > { %v865_v9 = vmul.f32 %v862_v7, %v789_v45 }
 0xebc   : > { %v868_v6 = vpop.permute.xlu1 %867 }
 0xebd   : > { %v870_v8 = vmul.f32 %v868_v6, %v862_v7 }
 0xebf   : > { %872 = vrot.lane.b32.xlu2 %v870_v8, %s1464_s10 }
 0xf19   : > { %v873_v10 = vpop.permute.xlu2 %872 }
 0xf1a   : > { %v1641_v11 = vadd.f32 %v873_v10, %v865_v9 }
 0xf1c   : > { %1356 = vtanh.f32 %v1641_v11 }
 0xf22   : > { %v1357_v12 = vpop.eup %1356 }
 0xf23   : > { %878 = vrot.lane.b32.xlu0 %v1357_v12, %s1463_s7 }
 0xf95   : > { %v879_v13 = vpop.permute.xlu0 %878 }
 0xf96   : > { %v1645_v14 = vmul.f32 %v879_v13, %v862_v7 }
 0xf98   : > { %v910_v15 = vpack.c.bf16 %v1645_v14, %v1645_v14 }
 0xf9a   : > { %912 = vrot.lane.b32.xlu1 %v910_v15, %s1464_s10 }
 0xfa2   : > { %541 = vrot.lane.b32.xlu1 %v1196_v16, %s1465_s12 }
 0xfaa   : > { %799 = vrot.lane.b32.xlu1 %v1220_v17, %s1465_s12 }
0x100c   : > { %v913_v19 = vpop.permute.xlu1 %912 }
0x100d   : > { %1234 = vmatmul.msk.bf16.vlgmr.msrb.gmra.mxu3 %vm310_vm1, %v913_v19  ;;  %v1198_v19 = vld [vmem:[%s1563_s17 + $0x4] sm:$0x3] }
0x1014   : > { %v542_v50 = vpop.permute.xlu1 %541 }
0x1015   : > { %v544_v52 = vadd.f32 %v542_v50, %v1602_v24 }
0x1017   : > { %v556_v4 = vmul.f32 1.25, %v544_v52 }
0x101c   : > { %v800_v6 = vpop.permute.xlu1 %799 }
0x101d   : > { %v802_v8 = vadd.f32 %v800_v6, %v1632_v48 }
0x101f   : > { %v814_v9 = vmul.f32 1.25, %v802_v8 }
0x1090   : > { %v926_v21 = vpop.f32.mrf.mxu3 }
0x1091   : > { %v930_v22 = vadd.f32 %v1233_v20, %v926_v21 }
0x1093   : > { %1358 = vtanh.f32 %v930_v22  ;;  %v1235_v29 = vmul.f32 -1.442695, %v930_v22 }
0x1095   : > { %1360 = vpow2.f32 %v1235_v29 }
0x1098   : > { %v928_v23 = vpop.f32.mrf.mxu3 }
0x1099   : > { %v1359_v25 = vpop.eup %1358  ;;  %v1199_v23 = vxor.u32 2147483648, %v1198_v19 }
0x109a   : > { %953 = vrot.lane.b32.xlu2 %v1359_v25, %s1463_s7 }
0x109b   : > { %v1361_v30 = vpop.eup %1360  ;;  %vm555_vm6 = vcmp.ge.s32.totalorder %v1199_v23, 3006477107 }
0x109c   : > { %v934_v31 = vadd.f32 1.0, %v1361_v30 }
0x109e   : > { %1362 = vrcp.f32 %v934_v31  ;;  %v946_v38 = vand.u32 2147483648, %v934_v31  ;;  %vm940_vm15 = vweird.f32 %v934_v31  ;;  %v944_v39 = vand.u32 2147483647, %v934_v31 }
0x10a0   : > { %v947_v41 = vor.u32 1.1754944e-38, %v946_v38  ;;  %vm945_vm2 = vcmp.eq.f32.partialorder %v944_v39, 8.507059e+37 }
0x10a2   : > { %371 = vrot.lane.b32.xlu2 %v369_v26, %s1465_s12  ;;  %v1190_v26 = vld [vmem:[%s1563_s17 + $0x2] sm:$0x3] }
0x10a4   : > { %v1363_v33 = vpop.eup %1362 }
0x10a5   : > { %v936_v34 = vmul.f32 %v1363_v33, %v934_v31  ;;  %vm941_vm1 = vweird.f32 %v1363_v33  ;;  %v1191_v31 = vxor.u32 2147483648, %v1190_v26 }
0x10a6   : > { %vm942_vm0 = vmor %vm940_vm15, %vm941_vm1 }
0x10a7   : > { %v937_v35 = vsub.f32 1.0, %v936_v34  ;;  %vm469_vm7 = vcmp.ge.s32.totalorder %v1191_v31, 3006477107  ;;  %v1206_v34 = vld [vmem:[%s1563_s17 + $0x6] sm:$0x3] }
0x10a8   : > { %v1207_v39 = vxor.u32 2147483648, %v1206_v34 }
0x10a9   : > { %v938_v36 = vmul.f32 %v1363_v33, %v937_v35 }
0x10aa   : > { %627 = vrot.lane.b32.xlu2 %v1204_v27, %s1465_s12  ;;  %vm641_vm9 = vcmp.ge.s32.totalorder %v1207_v39, 3006477107 }
0x10ab   : > { %v939_v37 = vadd.f32 %v1363_v33, %v938_v36 }
0x10ad   : > { %v943_v40 = vsel %vm942_vm0, %v1363_v33, %v939_v37 }
0x10ae   : > { %v1663_v43 = vsel %vm945_vm2, %v947_v41, %v943_v40  ;;  %v1230_v40 = vld [vmem:[%s1563_s17 + $0xc] sm:$0x3] }
0x10af   : > { %v951_v24 = vmul.f32 %v1663_v43, %v1641_v11 }
0x10b2   : > { %885 = vrot.lane.b32.xlu2 %v1228_v28, %s1465_s12  ;;  %v1222_v28 = vld [vmem:[%s1563_s17 + $0xa] sm:$0x3] }
0x10b3   : > { %v1223_v33 = vxor.u32 2147483648, %v1222_v28 }
0x10b5   : > { %vm813_vm8 = vcmp.ge.s32.totalorder %v1223_v33, 3006477107 }
0x10f4   : > { %v954_v42 = vpop.permute.xlu2 %953 }
0x10f5   : > { %v956_v44 = vmul.f32 %v954_v42, %v1663_v43 }
0x10f7   : > { %958 = vrot.lane.b32.xlu0 %v956_v44, %s1464_s10  ;;  %v1231_v44 = vxor.u32 2147483648, %v1230_v40 }
0x10f9   : > { %vm899_vm10 = vcmp.ge.s32.totalorder %v1231_v44, 3006477107 }
0x10fc   : > { %v372_v45 = vpop.permute.xlu2 %371 }
0x10fd   : > { %v374_v47 = vadd.f32 %v372_v45, %v1582_v32  ;;  %v381_v32 = vld [vmem:[%s1563_s17] sm:$0x3] }
0x10fe   : > { %v1184_v57 = vxor.u32 2147483648, %v381_v32 }
0x10ff   : > { %v385_v49 = vmul.f32 1.25, %v374_v47  ;;  %455 = vrot.lane.b32.xlu0 %v1188_v46, %s1465_s12 }
0x1100   : > { %vm384_vm3 = vcmp.ge.s32.totalorder %v1184_v57, 3006477107 }
0x1101   : > { %387 = vrot.lane.b32.xlu2 %v385_v49, %s1464_s10 }
0x1104   : > { %v628_v54 = vpop.permute.xlu2 %627 }
0x1105   : > { %v630_v10 = vadd.f32 %v628_v54, %v1612_v53  ;;  %v1214_v53 = vld [vmem:[%s1563_s17 + $0x8] sm:$0x3] }
0x1106   : > { %v1215_v12 = vxor.u32 2147483648, %v1214_v53 }
0x1107   : > { %713 = vrot.lane.b32.xlu0 %v1212_v51, %s1465_s12  ;;  %v1238_v51 = vld [vmem:[%s1563_s17 + $0xe] sm:$0x3]  ;;  %s1382_s17 = scalar_lea.hbm %s1381_s9, 16 }
0x1108   : > { %vm727_vm5 = vcmp.ge.s32.totalorder %v1215_v12, 3006477107  ;;  %p1383_p12 = scmp.ne.s32.totalorder %s1381_s9, %s1382_s17 }
0x1109   : > { %546 = vrot.lane.b32.xlu2 %v544_v52, %s1464_s10  ;;  %v1239_v52 = vxor.u32 2147483648, %v1238_v51 }
0x110a   : > { %p1384_p13 = pnand %p1383_p12, %p1535_p5 }
0x110b   : > { %vm985_vm11 = vcmp.ge.s32.totalorder %v1239_v52, 3006477107 }
0x110c   : > { %v886_v56 = vpop.permute.xlu2 %885  ;;  %p1385_p0 = pneg %p1384_p13 }
0x110d   : > { %v888_v48 = vadd.f32 %v886_v56, %v1645_v14 }
0x110f   : > { %971 = vrot.lane.b32.xlu0 %v1236_v55, %s1465_s12  ;;  %v900_v11 = vmul.f32 1.25, %v888_v48 }
0x115b   : > { %v388_v58 = vpop.permute.xlu2 %387 }
0x115c   : > { %v390_v59 = vsel %vm384_vm3, %v388_v58, 0.0 }
0x115d   : > { %391 = vst.msk [vmem:[%s1567_s25] sm:$0x3] %vm379_vm4, %v390_v59 }
0x1163   : > { %v547_v61 = vpop.permute.xlu2 %546 }
0x1164   : > { %1197 = vst.msk [vmem:[%s1565_s23 + $0x4] sm:$0x3] %vm379_vm4, %v547_v61 }
0x1169   : > { %v959_v62 = vpop.permute.xlu0 %958 }
0x116a   : > { %v961_v63 = vadd.f32 %v959_v62, %v951_v24 }
0x116c   : > { %1364 = vtanh.f32 %v961_v63 }
0x1171   : > { %v456_v0 = vpop.permute.xlu0 %455 }
0x1172   : > { %v1365_v1 = vpop.eup %1364  ;;  %v458_v2 = vadd.f32 %v456_v0, %v1592_v60 }
0x1173   : > { %964 = vrot.lane.b32.xlu1 %v1365_v1, %s1463_s7 }
0x1174   : > { %460 = vrot.lane.b32.xlu0 %v458_v2, %s1464_s10  ;;  %v470_v60 = vmul.f32 1.25, %v458_v2 }
0x1179   : > { %v714_v3 = vpop.permute.xlu0 %713 }
0x117a   : > { %v716_v5 = vadd.f32 %v714_v3, %v1622_v18  ;;  %v642_v18 = vmul.f32 1.25, %v630_v10 }
0x117b   : > { %376 = vrot.lane.b32.xlu1 %v374_v47, %s1464_s10 }
0x117c   : > { %v728_v7 = vmul.f32 1.25, %v716_v5  ;;  %558 = vrot.lane.b32.xlu0 %v556_v4, %s1464_s10 }
0x117e   : > { %730 = vrot.lane.b32.xlu2 %v728_v7, %s1464_s10 }
0x1181   : > { %v972_v14 = vpop.permute.xlu0 %971 }
0x1183   : > { %472 = vrot.lane.b32.xlu1 %v470_v60, %s1464_s10 }
0x1184   : > { %816 = vrot.lane.b32.xlu0 %v814_v9, %s1464_s10 }
0x1186   : > { %804 = vrot.lane.b32.xlu2 %v802_v8, %s1464_s10 }
0x118b   : > { %644 = vrot.lane.b32.xlu1 %v642_v18, %s1464_s10 }
0x118c   : > { %632 = vrot.lane.b32.xlu0 %v630_v10, %s1464_s10 }
0x1193   : > { %902 = vrot.lane.b32.xlu1 %v900_v11, %s1464_s10 }
0x1194   : > { %890 = vrot.lane.b32.xlu0 %v888_v48, %s1464_s10 }
0x119b   : > { %718 = vrot.lane.b32.xlu1 %v716_v5, %s1464_s10 }
0x119c   : > { %1000 = vrot.lane.b32.xlu0 %v961_v63, %s1465_s12  ;;  %s1386_s12 = scalar_lea.hbm %s1805_s5, 32 }
0x119d   : > { %p1388_p2 = scmp.lt.s32.totalorder %s1386_s12, %s1382_s17 }
0x119f   : > { %p1389_p3 = por %p1388_p2, %p1387_p1 }
0x11a1   : > { %p1390_p4 = pnand %p1389_p3, %p1385_p0 }
0x11d8   : > { %v731_v13 = vpop.permute.xlu2 %730 }
0x11d9   : > { %v733_v15 = vsel %vm727_vm5, %v731_v13, 0.0 }
0x11da   : > { %1216 = vst.msk [vmem:[%s1567_s25 + $0x8] sm:$0x3] %vm379_vm4, %v733_v15 }
0x11e0   : > { %v805_v16 = vpop.permute.xlu2 %804 }
0x11e1   : > { %1221 = vst.msk [vmem:[%s1565_s23 + $0xa] sm:$0x3] %vm379_vm4, %v805_v16 }
0x11e5   : > { %v965_v17 = vpop.permute.xlu1 %964 }
0x11e6   : > { %v967_v20 = vmul.f32 %v965_v17, %v1663_v43  ;;  %v461_v21 = vpop.permute.xlu0 %460 }
0x11e7   : > { %1189 = vst.msk [vmem:[%s1565_s23 + $0x2] sm:$0x3] %vm379_vm4, %v461_v21 }
0x11e8   : > { %v974_v22 = vadd.f32 %v972_v14, %v967_v20 }
0x11ea   : > { %976 = vrot.lane.b32.xlu1 %v974_v22, %s1464_s10  ;;  %v986_v25 = vmul.f32 1.25, %v974_v22 }
0x11ec   : > { %988 = vrot.lane.b32.xlu2 %v986_v25, %s1464_s10 }
0x11ed   : > { %v377_v27 = vpop.permute.xlu1 %376 }
0x11ee   : > { %380 = vst.msk [vmem:[%s1565_s23] sm:$0x3] %vm379_vm4, %v377_v27  ;;  %v559_v29 = vpop.permute.xlu0 %558 }
0x11ef   : > { %v561_v30 = vsel %vm555_vm6, %v559_v29, 0.0 }
0x11f0   : > { %1200 = vst.msk [vmem:[%s1567_s25 + $0x4] sm:$0x3] %vm379_vm4, %v561_v30 }
0x11f4   : > { %995 = vrot.lane.b32.xlu2 %v967_v20, %s1464_s10 }
0x11f5   : > { %v473_v35 = vpop.permute.xlu1 %472 }
0x11f6   : > { %v475_v36 = vsel %vm469_vm7, %v473_v35, 0.0  ;;  %v817_v37 = vpop.permute.xlu0 %816 }
0x11f7   : > { %1192 = vst.msk [vmem:[%s1567_s25 + $0x2] sm:$0x3] %vm379_vm4, %v475_v36  ;;  %v819_v38 = vsel %vm813_vm8, %v817_v37, 0.0 }
0x11f8   : > { %1224 = vst.msk [vmem:[%s1567_s25 + $0xa] sm:$0x3] %vm379_vm4, %v819_v38 }
0x11fd   : > { %v645_v41 = vpop.permute.xlu1 %644 }
0x11fe   : > { %v647_v42 = vsel %vm641_vm9, %v645_v41, 0.0  ;;  %v633_v43 = vpop.permute.xlu0 %632 }
0x11ff   : > { %1208 = vst.msk [vmem:[%s1567_s25 + $0x6] sm:$0x3] %vm379_vm4, %v647_v42 }
0x1200   : > { %1205 = vst.msk [vmem:[%s1565_s23 + $0x6] sm:$0x3] %vm379_vm4, %v633_v43 }
0x1205   : > { %v903_v45 = vpop.permute.xlu1 %902 }
0x1206   : > { %v905_v46 = vsel %vm899_vm10, %v903_v45, 0.0  ;;  %v891_v47 = vpop.permute.xlu0 %890 }
0x1207   : > { %1232 = vst.msk [vmem:[%s1567_s25 + $0xc] sm:$0x3] %vm379_vm4, %v905_v46 }
0x1208   : > { %1229 = vst.msk [vmem:[%s1565_s23 + $0xc] sm:$0x3] %vm379_vm4, %v891_v47 }
0x120d   : > { %v719_v49 = vpop.permute.xlu1 %718 }
0x120e   : > { %1213 = vst.msk [vmem:[%s1565_s23 + $0x8] sm:$0x3] %vm379_vm4, %v719_v49  ;;  %v1001_v50 = vpop.permute.xlu0 %1000 }
0x120f   : > { %1003 = vst.msk [vmem:[#allocation3] sm:$0x3] %vm379_vm4, %v1001_v50 }
0x1246   : > { %v989_v54 = vpop.permute.xlu2 %988 }
0x1247   : > { %v991_v55 = vsel %vm985_vm11, %v989_v54, 0.0 }
0x1248   : > { %1240 = vst.msk [vmem:[%s1567_s25 + $0xe] sm:$0x3] %vm379_vm4, %v991_v55 }
0x1249   : > { %1393 = shalt.err (!%p1390_p4)
}
0x124a   : > { %s1466_s25 = smov 2   ;;  %s1021_s17 = scalar_lea.hbm %s1804_s4, %s1251_s11 }
0x124b   : > { %1254 = dma.vmem_to_hbm [thread:$0]  (%p1535_p5), %s1040_s16, 256, %s1042_s26, %s1010_s6, %s1464_s10, %s1464_s10, %s1466_s25  }
0x124c   : > { %s1022_s8 = sshll.u32 %s1565_s23, 4  ;;  %s1024_s7 = sshll.u32 %s1021_s17, 4  ;;  %s1023_s8 = int_to_ptr.vmem [resolvable:$true] %s1022_s8  ;;  %s1025_s7 = int_to_ptr.hbm [resolvable:$true] %s1024_s7 }
0x124d   : > { %s1005_s12 = scalar_lea.sflag [#allocation5], %s1546_s30  ;;  %s1408_s13 = sshra.s32 %s1025_s7, 4  ;;  %s1409_s13 = int_to_ptr.hbm [resolvable:$true] %s1408_s13 }
0x124e   : > { %v996_v32 = vpop.permute.xlu2 %995  ;;  %s1410_s14 = scalar_lea.hbm %s1409_s13, 16  ;;  %s1414_s26 = scalar_lea.hbm %s1804_s4, 32 }
0x124f   : > { %998 = vst.msk [vmem:[#allocation2] sm:$0x3] %vm379_vm4, %v996_v32  ;;  %p1411_p7 = scmp.ne.s32.totalorder %s1409_s13, %s1410_s14  ;;  %p1415_p10 = scmp.lt.s32.totalorder %s1409_s13, %s1804_s4 }
0x1250   : > { %p1416_p11 = scmp.lt.s32.totalorder %s1414_s26, %s1410_s14 }
0x1251   : > { %p1412_p8 = pnand %p1411_p7, %p1535_p5 }
0x1252   : > { %p1417_p12 = por %p1416_p11, %p1415_p10 }
0x1253   : > { %p1413_p9 = pneg %p1412_p8 }
0x1255   : > { %p1418_p13 = pnand %p1417_p12, %p1413_p9 }
0x125c   : > { %v977_v56 = vpop.permute.xlu1 %976 }
0x125d   : > { %1237 = vst.msk [vmem:[%s1565_s23 + $0xe] sm:$0x3] %vm379_vm4, %v977_v56 }
0x125e   : > { %1421 = shalt.err (!%p1418_p13)
}
0x125f   : > { %1253 = dma.vmem_to_hbm [thread:$0]  (%p1535_p5), %s1023_s8, 256, %s1025_s7, %s1005_s12, %s1464_s10, %s1464_s10, %s1466_s25  }
0x1260 PF: > { %p1264_p0 = scmp.ge.s32.totalorder %s1460_s21, 2  ;;  %s1056_s30 = sand.u32 1, %s1448_s18  }
0x1261   : > { %s1057_s23 = scalar_lea.sflag [#allocation5], %s1056_s30 }
0x1262   : > { %p1258_p1 = pnand %p1264_p0, %p1539_p6 }
0x1264   : > { %p1259_p2 = pneg %p1258_p1 }
0x1266   : > { %1439 = dma.done.wait (%p1259_p2), %s1057_s23, 256  }
0x1267   : > { %1441 = vsyncadd (%p1259_p2), %s1057_s23, 4294967040  ;;  %s1067_s15 = scalar_lea.sflag [#allocation7], %s1056_s30 }
0x1268   : > { %1443 = dma.done.wait (%p1259_p2), %s1067_s15, 256  }
0x1269   : > { %1445 = vsyncadd (%p1259_p2), %s1067_s15, 4294967040  ;;  %p19_p5 = scmp.ge.s32.totalorder %s1522_s24, 4   ;;  %s1808_s18 = smov %s1452_s19 }
0x126a   : > { %s1809_s19 = smov %s1456_s20  ;;  %s1810_s20 = smov %s1533_s27 }
0x126b   : > { %s1811_s21 = smov %s1522_s24  ;;  %21 = sbr.rel (!%p19_p5) target bundleno = 5 (0x5), region = 133 }
0x1270   :  { %1073 = vsyncpa [#allocation5], 1 }
0x1271   :  { %1075 = vsyncpa [#allocation5 + $0x1], 1 }
0x1272   :  { %1076 = vsyncpa [#allocation7], 1 }
0x1273   :  { %1078 = vsyncpa [#allocation7 + $0x1], 1 }

</bundles_post_ra>
